<compile_context>
chip_gen: v7x
topology: tpu7x:2x2x1
jax: 0.10.0
libtpu: 0.0.40
codegen_flags: <defaults>
</compile_context>

<pallas_src>
import jax
import jax.numpy as jnp
from jax.experimental import pallas as pl
from jax.experimental.pallas import tpu as pltpu


def _round_up(x, m):
    return ((x + m - 1) // m) * m


def _leaky_relu(x, slope=0.2):
    # Bit-identical to where(x>0, x, slope*x) for 0 < slope < 1; 2 VPU ops.
    return jnp.maximum(x, slope * x)


def discriminator_kernel(xi_ref, xc_ref, w1i_ref, w1c_ref, b1_ref,
                         w2_ref, b2_ref, w3p_ref, b3_ref, out_ref):
    """Fused 3-layer MLP for one batch tile (TB rows)."""
    # In-kernel bf16 cast (activations arrive f32 straight from HBM).
    xi = xi_ref[...].astype(jnp.bfloat16)              # (TB, 256)
    xc = xc_ref[...].astype(jnp.bfloat16)              # (TB, 8)

    # Layer 1: split-K matmul (img part K=256 aligned, cond part K=8), f32 acc.
    h1 = jnp.dot(xi, w1i_ref[...], preferred_element_type=jnp.float32)
    h1 = h1 + jnp.dot(xc, w1c_ref[...], preferred_element_type=jnp.float32)
    h1 = _leaky_relu(h1 + b1_ref[...])                 # (TB, 512) f32

    # Layer 2 (Dropout(0.4) is identity at inference time).
    # TODO(synk): training-mode dropout (prng_seed + prng_random_bits mask,
    # scale by 1/0.6) not implemented; this kernel is inference-only.
    h2 = jnp.dot(h1.astype(jnp.bfloat16), w2_ref[...],
                 preferred_element_type=jnp.float32)
    h2 = _leaky_relu(h2 + b2_ref[...])                 # (TB, 512) f32

    # Layer 3 on the MXU: W3 zero-padded to (512, 128); only column 0 is real.
    h3 = jnp.dot(h2.astype(jnp.bfloat16), w3p_ref[...],
                 preferred_element_type=jnp.float32)   # (TB, 128)
    out_ref[...] = (h3[:, 0:1] + b3_ref[0, 0]).astype(out_ref.dtype)  # (TB, 1)


def _choose_tb(B):
    """Batch tile: big enough to amortize per-step overhead, >=2 steps for v7x."""
    b8 = _round_up(max(B, 8), 8)
    if b8 <= 128:
        return b8                       # tiny batch: single small step
    # >= 2 grid steps so the "parallel" batch axis shards over both v7x
    # TensorCores; tiles are 128-multiples (v5e MXU M, 256 preferred on
    # v6e/v7x) and capped at 1024 rows. VMEM is nowhere near the limit.
    tb = min(1024, _round_up(b8, 256) // 2)
    return max(128, (tb // 128) * 128)


def discriminator_forward(img, conds, params, tb=None):
    """img: (B, C, H, W); conds: (B, cond_dim). Returns (B, 1) float32."""
    w1i, w1c, b1, w2, b2, w3p, b3 = params
    B = img.shape[0]

    img_flat = img.reshape(B, -1)          # (B, 256) -- no dtype cast here
    d_img = img_flat.shape[1]
    cond_dim = conds.shape[1]
    hidden = w2.shape[0]
    n_pad = w3p.shape[1]                   # 128 (zero-padded output width)

    if tb is None:
        tb = _choose_tb(B)
    b_pad = _round_up(B, tb)
    if b_pad != B:
        pad = b_pad - B
        img_flat = jnp.pad(img_flat, ((0, pad), (0, 0)))
        conds = jnp.pad(conds, ((0, pad), (0, 0)))

    grid = (b_pad // tb,)

    def act_spec(d):
        return pl.BlockSpec((tb, d), lambda i: (i, 0))

    def resident_spec(shape, single_buffer):
        # Constant index_map: tile identical across grid steps (VMEM-resident).
        if single_buffer:
            return pl.BlockSpec(shape, lambda i: (0, 0),
                                pipeline_mode=pl.Buffered(1))
        return pl.BlockSpec(shape, lambda i: (0, 0))

    def build(single_buffer):
        return pl.pallas_call(
            discriminator_kernel,
            out_shape=jax.ShapeDtypeStruct((b_pad, 1), jnp.float32),
            grid=grid,
            in_specs=[
                act_spec(d_img),                                   # img acts
                act_spec(cond_dim),                                # cond acts
                resident_spec((d_img, hidden), single_buffer),     # W1_img
                resident_spec((cond_dim, hidden), single_buffer),  # W1_cond
                resident_spec((1, hidden), single_buffer),         # b1
                resident_spec((hidden, hidden), single_buffer),    # W2
                resident_spec((1, hidden), single_buffer),         # b2
                resident_spec((hidden, n_pad), single_buffer),     # W3 padded
                pl.BlockSpec(memory_space=pltpu.MemorySpace.SMEM), # b3 scalar
            ],
            out_specs=act_spec(1),
            compiler_params=pltpu.CompilerParams(
                dimension_semantics=("parallel",)),
        )

    args = (img_flat, conds, w1i, w1c, b1, w2, b2, w3p, b3)
    try:
        out = build(True)(*args)
    except Exception:
        # Fallback if single-buffered pipeline_mode is unsupported on this
        # jax version: default double-buffered resident weights (still tiny).
        out = build(False)(*args)

    return out[:B]


def init_params(key, img_dim, cond_dim, hidden=512, out_dim=1, n_pad=128):
    """Deterministic Linear-layer params.

    Weights stored (in, out); W1 is pre-split into img/cond parts; matmul
    operand weights are bf16 (f32 accumulation in-kernel), biases stay f32.
    W3 is zero-padded from (hidden, 1) to (hidden, 128) for an MXU epilogue.
    """
    in_dim = img_dim + cond_dim
    ks = jax.random.split(key, 6)

    def linear(kw, kb, fan_in, fan_out):
        bound = 1.0 / jnp.sqrt(jnp.float32(fan_in))
        w = jax.random.uniform(kw, (fan_in, fan_out), jnp.float32, -bound, bound)
        b = jax.random.uniform(kb, (1, fan_out), jnp.float32, -bound, bound)
        return w, b

    w1, b1 = linear(ks[0], ks[1], in_dim, hidden)
    w2, b2 = linear(ks[2], ks[3], hidden, hidden)
    w3, b3 = linear(ks[4], ks[5], hidden, out_dim)

    w1_img = w1[:img_dim].astype(jnp.bfloat16)            # (img_dim, hidden)
    w1_cond = w1[img_dim:].astype(jnp.bfloat16)           # (cond_dim, hidden)
    w2 = w2.astype(jnp.bfloat16)                           # (hidden, hidden)
    w3_pad = jnp.zeros((hidden, n_pad), jnp.float32).at[:, :out_dim].set(w3)
    w3_pad = w3_pad.astype(jnp.bfloat16)                   # (hidden, 128)
    return (w1_img, w1_cond, b1, w2, b2, w3_pad, b3)       # b3: (1, 1) f32


def reference_forward(img, conds, params):
    """Plain-JAX reference mirroring the kernel's bf16-operand / f32-acc math."""
    w1i, w1c, b1, w2, b2, w3p, b3 = params
    B = img.shape[0]
    xi = img.reshape(B, -1).astype(jnp.bfloat16)
    xc = conds.astype(jnp.bfloat16)
    h1 = (jnp.dot(xi, w1i, preferred_element_type=jnp.float32)
          + jnp.dot(xc, w1c, preferred_element_type=jnp.float32) + b1)
    h1 = jnp.maximum(h1, 0.2 * h1)
    h2 = jnp.dot(h1.astype(jnp.bfloat16), w2,
                 preferred_element_type=jnp.float32) + b2
    h2 = jnp.maximum(h2, 0.2 * h2)
    h3 = jnp.dot(h2.astype(jnp.bfloat16), w3p,
                 preferred_element_type=jnp.float32)
    return h3[:, 0:1] + b3[0, 0]


if __name__ == "__main__":
    # Small shapes consistent with the module: opt.img_shape=(1,16,16), opt.cond_dim=8.
    B, C, H, W = 2, 1, 16, 16
    cond_dim = 8
    img_dim = C * H * W  # 256 (128-aligned contraction for layer 1)

    key = jax.random.PRNGKey(0)
    k_img, k_cond, k_param = jax.random.split(key, 3)

    img = jax.random.normal(k_img, (B, C, H, W), jnp.float32)
    conds = jax.random.normal(k_cond, (B, cond_dim), jnp.float32)
    params = init_params(k_param, img_dim, cond_dim)

    validity = discriminator_forward(img, conds, params)
    validity = jax.block_until_ready(validity)

    ref = reference_forward(img, conds, params)
    assert validity.shape == (B, 1)
    assert jnp.allclose(validity, ref, atol=1e-2, rtol=1e-2), (
        f"mismatch: {validity} vs {ref}")

    print("KERNEL_OK")
</pallas_src>

<mosaic_0001>
module attributes {stable_mosaic.version = 11 : i64} {
  func.func @discriminator_kernel(%arg0: i32, %arg1: memref<8x256xf32, #tpu.memory_space<vmem>>, %arg2: memref<8x8xf32, #tpu.memory_space<vmem>>, %arg3: memref<256x512xbf16, #tpu.memory_space<vmem>>, %arg4: memref<8x512xbf16, #tpu.memory_space<vmem>>, %arg5: memref<1x512xf32, #tpu.memory_space<vmem>>, %arg6: memref<512x512xbf16, #tpu.memory_space<vmem>>, %arg7: memref<1x512xf32, #tpu.memory_space<vmem>>, %arg8: memref<512x128xbf16, #tpu.memory_space<vmem>>, %arg9: memref<1x1xf32, #tpu.memory_space<smem>>, %arg10: memref<8x1xf32, #tpu.memory_space<vmem>>) attributes {dimension_semantics = [#tpu.dimension_semantics<parallel>], iteration_bounds = array<i64: 1>, scalar_prefetch = 0 : i64, scratch_operands = 0 : i64, tpu.core_type = #tpu.core_type<tc>, window_params = [{transform_indices = @transform_0, window_bounds = array<i64: 8, 256>}, {transform_indices = @transform_1, window_bounds = array<i64: 8, 8>}, {pipeline_mode = #tpu.pipeline_mode<synchronous>, transform_indices = @transform_2, window_bounds = array<i64: 256, 512>}, {pipeline_mode = #tpu.pipeline_mode<synchronous>, transform_indices = @transform_3, window_bounds = array<i64: 8, 512>}, {pipeline_mode = #tpu.pipeline_mode<synchronous>, transform_indices = @transform_4, window_bounds = array<i64: 1, 512>}, {pipeline_mode = #tpu.pipeline_mode<synchronous>, transform_indices = @transform_5, window_bounds = array<i64: 512, 512>}, {pipeline_mode = #tpu.pipeline_mode<synchronous>, transform_indices = @transform_6, window_bounds = array<i64: 1, 512>}, {pipeline_mode = #tpu.pipeline_mode<synchronous>, transform_indices = @transform_7, window_bounds = array<i64: 512, 128>}, {transform_indices = @transform_8, window_bounds = array<i64: 1, 1>}, {transform_indices = @transform_9, window_bounds = array<i64: 8, 1>}]} {
    %c0 = arith.constant 0 : index
    %c0_0 = arith.constant 0 : index
    %0 = vector.load %arg1[%c0, %c0_0] : memref<8x256xf32, #tpu.memory_space<vmem>>, vector<8x256xf32>
    %1 = arith.truncf %0 : vector<8x256xf32> to vector<8x256xbf16>
    %c0_1 = arith.constant 0 : index
    %c0_2 = arith.constant 0 : index
    %2 = vector.load %arg2[%c0_1, %c0_2] : memref<8x8xf32, #tpu.memory_space<vmem>>, vector<8x8xf32>
    %3 = arith.truncf %2 : vector<8x8xf32> to vector<8x8xbf16>
    %c0_3 = arith.constant 0 : index
    %c0_4 = arith.constant 0 : index
    %4 = vector.load %arg3[%c0_3, %c0_4] : memref<256x512xbf16, #tpu.memory_space<vmem>>, vector<256x512xbf16>
    %cst = arith.constant dense<0.000000e+00> : vector<8x512xf32>
    %5 = tpu.matmul %1, %4, %cst {dimension_numbers = #tpu.dot_dimension_numbers<[1], [0], [0], [1], [0, 0, 1, 1], [], []>} : vector<8x256xbf16>, vector<256x512xbf16>, vector<8x512xf32> -> vector<8x512xf32>
    %c0_5 = arith.constant 0 : index
    %c0_6 = arith.constant 0 : index
    %6 = vector.load %arg4[%c0_5, %c0_6] : memref<8x512xbf16, #tpu.memory_space<vmem>>, vector<8x512xbf16>
    %cst_7 = arith.constant dense<0.000000e+00> : vector<8x512xf32>
    %7 = tpu.matmul %3, %6, %cst_7 {dimension_numbers = #tpu.dot_dimension_numbers<[1], [0], [0], [1], [0, 0, 1, 1], [], []>} : vector<8x8xbf16>, vector<8x512xbf16>, vector<8x512xf32> -> vector<8x512xf32>
    %8 = arith.addf %5, %7 : vector<8x512xf32>
    %c0_8 = arith.constant 0 : index
    %c0_9 = arith.constant 0 : index
    %9 = vector.load %arg5[%c0_8, %c0_9] : memref<1x512xf32, #tpu.memory_space<vmem>>, vector<1x512xf32>
    %10 = vector.broadcast %9 : vector<1x512xf32> to vector<8x512xf32>
    %11 = arith.addf %8, %10 : vector<8x512xf32>
    %cst_10 = arith.constant 2.000000e-01 : f32
    %12 = vector.broadcast %cst_10 : f32 to vector<8x512xf32>
    %13 = arith.mulf %12, %11 : vector<8x512xf32>
    %14 = arith.maximumf %11, %13 : vector<8x512xf32>
    %15 = arith.truncf %14 : vector<8x512xf32> to vector<8x512xbf16>
    %c0_11 = arith.constant 0 : index
    %c0_12 = arith.constant 0 : index
    %16 = vector.load %arg6[%c0_11, %c0_12] : memref<512x512xbf16, #tpu.memory_space<vmem>>, vector<512x512xbf16>
    %cst_13 = arith.constant dense<0.000000e+00> : vector<8x512xf32>
    %17 = tpu.matmul %15, %16, %cst_13 {dimension_numbers = #tpu.dot_dimension_numbers<[1], [0], [0], [1], [0, 0, 1, 1], [], []>} : vector<8x512xbf16>, vector<512x512xbf16>, vector<8x512xf32> -> vector<8x512xf32>
    %c0_14 = arith.constant 0 : index
    %c0_15 = arith.constant 0 : index
    %18 = vector.load %arg7[%c0_14, %c0_15] : memref<1x512xf32, #tpu.memory_space<vmem>>, vector<1x512xf32>
    %19 = vector.broadcast %18 : vector<1x512xf32> to vector<8x512xf32>
    %20 = arith.addf %17, %19 : vector<8x512xf32>
    %cst_16 = arith.constant 2.000000e-01 : f32
    %21 = vector.broadcast %cst_16 : f32 to vector<8x512xf32>
    %22 = arith.mulf %21, %20 : vector<8x512xf32>
    %23 = arith.maximumf %20, %22 : vector<8x512xf32>
    %24 = arith.truncf %23 : vector<8x512xf32> to vector<8x512xbf16>
    %c0_17 = arith.constant 0 : index
    %c0_18 = arith.constant 0 : index
    %25 = vector.load %arg8[%c0_17, %c0_18] : memref<512x128xbf16, #tpu.memory_space<vmem>>, vector<512x128xbf16>
    %cst_19 = arith.constant dense<0.000000e+00> : vector<8x128xf32>
    %26 = tpu.matmul %24, %25, %cst_19 {dimension_numbers = #tpu.dot_dimension_numbers<[1], [0], [0], [1], [0, 0, 1, 1], [], []>} : vector<8x512xbf16>, vector<512x128xbf16>, vector<8x128xf32> -> vector<8x128xf32>
    %27 = vector.extract_strided_slice %26 {offsets = [0, 0], sizes = [8, 1], strides = [1, 1]} : vector<8x128xf32> to vector<8x1xf32>
    %c0_20 = arith.constant 0 : index
    %c0_21 = arith.constant 0 : index
    %28 = memref.load %arg9[%c0_20, %c0_21] : memref<1x1xf32, #tpu.memory_space<smem>>
    %29 = vector.broadcast %28 : f32 to vector<8x1xf32>
    %30 = arith.addf %27, %29 : vector<8x1xf32>
    %c0_22 = arith.constant 0 : index
    %c0_23 = arith.constant 0 : index
    %31 = vector.load %arg10[%c0_22, %c0_23] : memref<8x1xf32, #tpu.memory_space<vmem>>, vector<8x1xf32>
    tpu.vector_store %arg10[%c0_22, %c0_23], %30 {strides = array<i32>} : memref<8x1xf32, #tpu.memory_space<vmem>>, vector<8x1xf32>,
    return
  }
  func.func @transform_0(%arg0: i32) -> (i32, i32) {
    %c0_i32 = arith.constant 0 : i32
    %c0_i32_0 = arith.constant 0 : i32
    return %arg0, %c0_i32 : i32, i32
  }
  func.func @transform_1(%arg0: i32) -> (i32, i32) {
    %c0_i32 = arith.constant 0 : i32
    %c0_i32_0 = arith.constant 0 : i32
    return %arg0, %c0_i32 : i32, i32
  }
  func.func @transform_2(%arg0: i32) -> (i32, i32) {
    %c0_i32 = arith.constant 0 : i32
    %c0_i32_0 = arith.constant 0 : i32
    %c0_i32_1 = arith.constant 0 : i32
    return %c0_i32, %c0_i32_0 : i32, i32
  }
  func.func @transform_3(%arg0: i32) -> (i32, i32) {
    %c0_i32 = arith.constant 0 : i32
    %c0_i32_0 = arith.constant 0 : i32
    %c0_i32_1 = arith.constant 0 : i32
    return %c0_i32, %c0_i32_0 : i32, i32
  }
  func.func @transform_4(%arg0: i32) -> (i32, i32) {
    %c0_i32 = arith.constant 0 : i32
    %c0_i32_0 = arith.constant 0 : i32
    %c0_i32_1 = arith.constant 0 : i32
    return %c0_i32, %c0_i32_0 : i32, i32
  }
  func.func @transform_5(%arg0: i32) -> (i32, i32) {
    %c0_i32 = arith.constant 0 : i32
    %c0_i32_0 = arith.constant 0 : i32
    %c0_i32_1 = arith.constant 0 : i32
    return %c0_i32, %c0_i32_0 : i32, i32
  }
  func.func @transform_6(%arg0: i32) -> (i32, i32) {
    %c0_i32 = arith.constant 0 : i32
    %c0_i32_0 = arith.constant 0 : i32
    %c0_i32_1 = arith.constant 0 : i32
    return %c0_i32, %c0_i32_0 : i32, i32
  }
  func.func @transform_7(%arg0: i32) -> (i32, i32) {
    %c0_i32 = arith.constant 0 : i32
    %c0_i32_0 = arith.constant 0 : i32
    %c0_i32_1 = arith.constant 0 : i32
    return %c0_i32, %c0_i32_0 : i32, i32
  }
  func.func @transform_8(%arg0: i32) -> (i32, i32) {
    %c0_i32 = arith.constant 0 : i32
    %c0_i32_0 = arith.constant 0 : i32
    %c0_i32_1 = arith.constant 0 : i32
    return %c0_i32, %c0_i32_0 : i32, i32
  }
  func.func @transform_9(%arg0: i32) -> (i32, i32) {
    %c0_i32 = arith.constant 0 : i32
    %c0_i32_0 = arith.constant 0 : i32
    return %arg0, %c0_i32 : i32, i32
  }
}

module attributes {stable_mosaic.version = 11 : i64} {
  func.func @discriminator_kernel(%arg0: i32, %arg1: memref<8x256xf32, #tpu.memory_space<vmem>>, %arg2: memref<8x8xf32, #tpu.memory_space<vmem>>, %arg3: memref<256x512xbf16, #tpu.memory_space<vmem>>, %arg4: memref<8x512xbf16, #tpu.memory_space<vmem>>, %arg5: memref<1x512xf32, #tpu.memory_space<vmem>>, %arg6: memref<512x512xbf16, #tpu.memory_space<vmem>>, %arg7: memref<1x512xf32, #tpu.memory_space<vmem>>, %arg8: memref<512x128xbf16, #tpu.memory_space<vmem>>, %arg9: memref<1x1xf32, #tpu.memory_space<smem>>, %arg10: memref<8x1xf32, #tpu.memory_space<vmem>>) attributes {dimension_semantics = [#tpu.dimension_semantics<parallel>], iteration_bounds = array<i64: 1>, scalar_prefetch = 0 : i64, scratch_operands = 0 : i64, tpu.core_type = #tpu.core_type<tc>, window_params = [{transform_indices = @transform_0, window_bounds = array<i64: 8, 256>}, {transform_indices = @transform_1, window_bounds = array<i64: 8, 8>}, {pipeline_mode = #tpu.pipeline_mode<synchronous>, transform_indices = @transform_2, window_bounds = array<i64: 256, 512>}, {pipeline_mode = #tpu.pipeline_mode<synchronous>, transform_indices = @transform_3, window_bounds = array<i64: 8, 512>}, {pipeline_mode = #tpu.pipeline_mode<synchronous>, transform_indices = @transform_4, window_bounds = array<i64: 1, 512>}, {pipeline_mode = #tpu.pipeline_mode<synchronous>, transform_indices = @transform_5, window_bounds = array<i64: 512, 512>}, {pipeline_mode = #tpu.pipeline_mode<synchronous>, transform_indices = @transform_6, window_bounds = array<i64: 1, 512>}, {pipeline_mode = #tpu.pipeline_mode<synchronous>, transform_indices = @transform_7, window_bounds = array<i64: 512, 128>}, {transform_indices = @transform_8, window_bounds = array<i64: 1, 1>}, {transform_indices = @transform_9, window_bounds = array<i64: 8, 1>}]} {
    %c0 = arith.constant 0 : index
    %c0_0 = arith.constant 0 : index
    %0 = vector.load %arg1[%c0, %c0_0] : memref<8x256xf32, #tpu.memory_space<vmem>>, vector<8x256xf32>
    %1 = arith.truncf %0 : vector<8x256xf32> to vector<8x256xbf16>
    %c0_1 = arith.constant 0 : index
    %c0_2 = arith.constant 0 : index
    %2 = vector.load %arg2[%c0_1, %c0_2] : memref<8x8xf32, #tpu.memory_space<vmem>>, vector<8x8xf32>
    %3 = arith.truncf %2 : vector<8x8xf32> to vector<8x8xbf16>
    %c0_3 = arith.constant 0 : index
    %c0_4 = arith.constant 0 : index
    %4 = vector.load %arg3[%c0_3, %c0_4] : memref<256x512xbf16, #tpu.memory_space<vmem>>, vector<256x512xbf16>
    %cst = arith.constant dense<0.000000e+00> : vector<8x512xf32>
    %5 = tpu.matmul %1, %4, %cst {dimension_numbers = #tpu.dot_dimension_numbers<[1], [0], [0], [1], [0, 0, 1, 1], [], []>} : vector<8x256xbf16>, vector<256x512xbf16>, vector<8x512xf32> -> vector<8x512xf32>
    %c0_5 = arith.constant 0 : index
    %c0_6 = arith.constant 0 : index
    %6 = vector.load %arg4[%c0_5, %c0_6] : memref<8x512xbf16, #tpu.memory_space<vmem>>, vector<8x512xbf16>
    %cst_7 = arith.constant dense<0.000000e+00> : vector<8x512xf32>
    %7 = tpu.matmul %3, %6, %cst_7 {dimension_numbers = #tpu.dot_dimension_numbers<[1], [0], [0], [1], [0, 0, 1, 1], [], []>} : vector<8x8xbf16>, vector<8x512xbf16>, vector<8x512xf32> -> vector<8x512xf32>
    %8 = arith.addf %5, %7 : vector<8x512xf32>
    %c0_8 = arith.constant 0 : index
    %c0_9 = arith.constant 0 : index
    %9 = vector.load %arg5[%c0_8, %c0_9] : memref<1x512xf32, #tpu.memory_space<vmem>>, vector<1x512xf32>
    %10 = vector.broadcast %9 : vector<1x512xf32> to vector<8x512xf32>
    %11 = arith.addf %8, %10 : vector<8x512xf32>
    %cst_10 = arith.constant 2.000000e-01 : f32
    %12 = vector.broadcast %cst_10 : f32 to vector<8x512xf32>
    %13 = arith.mulf %12, %11 : vector<8x512xf32>
    %14 = arith.maximumf %11, %13 : vector<8x512xf32>
    %15 = arith.truncf %14 : vector<8x512xf32> to vector<8x512xbf16>
    %c0_11 = arith.constant 0 : index
    %c0_12 = arith.constant 0 : index
    %16 = vector.load %arg6[%c0_11, %c0_12] : memref<512x512xbf16, #tpu.memory_space<vmem>>, vector<512x512xbf16>
    %cst_13 = arith.constant dense<0.000000e+00> : vector<8x512xf32>
    %17 = tpu.matmul %15, %16, %cst_13 {dimension_numbers = #tpu.dot_dimension_numbers<[1], [0], [0], [1], [0, 0, 1, 1], [], []>} : vector<8x512xbf16>, vector<512x512xbf16>, vector<8x512xf32> -> vector<8x512xf32>
    %c0_14 = arith.constant 0 : index
    %c0_15 = arith.constant 0 : index
    %18 = vector.load %arg7[%c0_14, %c0_15] : memref<1x512xf32, #tpu.memory_space<vmem>>, vector<1x512xf32>
    %19 = vector.broadcast %18 : vector<1x512xf32> to vector<8x512xf32>
    %20 = arith.addf %17, %19 : vector<8x512xf32>
    %cst_16 = arith.constant 2.000000e-01 : f32
    %21 = vector.broadcast %cst_16 : f32 to vector<8x512xf32>
    %22 = arith.mulf %21, %20 : vector<8x512xf32>
    %23 = arith.maximumf %20, %22 : vector<8x512xf32>
    %24 = arith.truncf %23 : vector<8x512xf32> to vector<8x512xbf16>
    %c0_17 = arith.constant 0 : index
    %c0_18 = arith.constant 0 : index
    %25 = vector.load %arg8[%c0_17, %c0_18] : memref<512x128xbf16, #tpu.memory_space<vmem>>, vector<512x128xbf16>
    %cst_19 = arith.constant dense<0.000000e+00> : vector<8x128xf32>
    %26 = tpu.matmul %24, %25, %cst_19 {dimension_numbers = #tpu.dot_dimension_numbers<[1], [0], [0], [1], [0, 0, 1, 1], [], []>} : vector<8x512xbf16>, vector<512x128xbf16>, vector<8x128xf32> -> vector<8x128xf32>
    %27 = vector.extract_strided_slice %26 {offsets = [0, 0], sizes = [8, 1], strides = [1, 1]} : vector<8x128xf32> to vector<8x1xf32>
    %c0_20 = arith.constant 0 : index
    %c0_21 = arith.constant 0 : index
    %28 = memref.load %arg9[%c0_20, %c0_21] : memref<1x1xf32, #tpu.memory_space<smem>>
    %29 = vector.broadcast %28 : f32 to vector<8x1xf32>
    %30 = arith.addf %27, %29 : vector<8x1xf32>
    %c0_22 = arith.constant 0 : index
    %c0_23 = arith.constant 0 : index
    %31 = vector.load %arg10[%c0_22, %c0_23] : memref<8x1xf32, #tpu.memory_space<vmem>>, vector<8x1xf32>
    tpu.vector_store %arg10[%c0_22, %c0_23], %30 {strides = array<i32>} : memref<8x1xf32, #tpu.memory_space<vmem>>, vector<8x1xf32>,
    return
  }
  func.func @transform_0(%arg0: i32) -> (i32, i32) {
    %c0_i32 = arith.constant 0 : i32
    %c0_i32_0 = arith.constant 0 : i32
    return %arg0, %c0_i32 : i32, i32
  }
  func.func @transform_1(%arg0: i32) -> (i32, i32) {
    %c0_i32 = arith.constant 0 : i32
    %c0_i32_0 = arith.constant 0 : i32
    return %arg0, %c0_i32 : i32, i32
  }
  func.func @transform_2(%arg0: i32) -> (i32, i32) {
    %c0_i32 = arith.constant 0 : i32
    %c0_i32_0 = arith.constant 0 : i32
    %c0_i32_1 = arith.constant 0 : i32
    return %c0_i32, %c0_i32_0 : i32, i32
  }
  func.func @transform_3(%arg0: i32) -> (i32, i32) {
    %c0_i32 = arith.constant 0 : i32
    %c0_i32_0 = arith.constant 0 : i32
    %c0_i32_1 = arith.constant 0 : i32
    return %c0_i32, %c0_i32_0 : i32, i32
  }
  func.func @transform_4(%arg0: i32) -> (i32, i32) {
    %c0_i32 = arith.constant 0 : i32
    %c0_i32_0 = arith.constant 0 : i32
    %c0_i32_1 = arith.constant 0 : i32
    return %c0_i32, %c0_i32_0 : i32, i32
  }
  func.func @transform_5(%arg0: i32) -> (i32, i32) {
    %c0_i32 = arith.constant 0 : i32
    %c0_i32_0 = arith.constant 0 : i32
    %c0_i32_1 = arith.constant 0 : i32
    return %c0_i32, %c0_i32_0 : i32, i32
  }
  func.func @transform_6(%arg0: i32) -> (i32, i32) {
    %c0_i32 = arith.constant 0 : i32
    %c0_i32_0 = arith.constant 0 : i32
    %c0_i32_1 = arith.constant 0 : i32
    return %c0_i32, %c0_i32_0 : i32, i32
  }
  func.func @transform_7(%arg0: i32) -> (i32, i32) {
    %c0_i32 = arith.constant 0 : i32
    %c0_i32_0 = arith.constant 0 : i32
    %c0_i32_1 = arith.constant 0 : i32
    return %c0_i32, %c0_i32_0 : i32, i32
  }
  func.func @transform_8(%arg0: i32) -> (i32, i32) {
    %c0_i32 = arith.constant 0 : i32
    %c0_i32_0 = arith.constant 0 : i32
    %c0_i32_1 = arith.constant 0 : i32
    return %c0_i32, %c0_i32_0 : i32, i32
  }
  func.func @transform_9(%arg0: i32) -> (i32, i32) {
    %c0_i32 = arith.constant 0 : i32
    %c0_i32_0 = arith.constant 0 : i32
    return %arg0, %c0_i32 : i32, i32
  }
}

</mosaic_0001>

<bundles_post_ra>
// kernel: tpu_custom_call.1
= control target key start
LH: loop header
LB: loop body
LE: loop exit
PB: predicated region body
PF: predicated region fallthrough
CT: control target
= control target key end

     0   :  { %15 = vsyncpa [#allocation4], 0  ;;  %s2994_s0 = inlined_call_operand.hbm [shape: f32[8,256], index: 0, kind: input, shape index: {}]   ;;  %s2995_s1 = inlined_call_operand.hbm [shape: f32[8,8], index: 1, kind: input, shape index: {}]   ;;  %s2996_s2 = inlined_call_operand.hbm [shape: bf16[256,512], index: 2, kind: input, shape index: {}]   ;;  %s2997_s3 = inlined_call_operand.hbm [shape: bf16[8,512], index: 3, kind: input, shape index: {}]   ;;  %s2998_s4 = inlined_call_operand.vmem [shape: f32[1,512], index: 4, kind: input, shape index: {}]   ;;  %s2999_s5 = inlined_call_operand.hbm [shape: bf16[512,512], index: 5, kind: input, shape index: {}]   ;;  %s3000_s6 = inlined_call_operand.vmem [shape: f32[1,512], index: 6, kind: input, shape index: {}]   ;;  %s3001_s7 = inlined_call_operand.hbm [shape: bf16[512,128], index: 7, kind: input, shape index: {}]   ;;  %s3002_s8 = inlined_call_operand.<no memory space> [shape: f32[1,1], index: 8, kind: input, shape index: {}]   ;;  %s3003_s9 = inlined_call_operand.vmem [shape: f32[8,1], index: 9, kind: output, shape index: {}]  }
   0x1   :  { %16 = vsyncpa [#allocation6], 0 }
   0x2   :  { %17 = vsyncpa [#allocation9], 0 }
   0x3   :  { %18 = vsyncpa [#allocation12], 0  ;;  %s2809_s30 = smov [#allocation5]   ;;  %s2810_s11 = smov [#allocation8]  }
   0x4   :  { %s35_s10 = sshll.u32 %s2809_s30, 4  ;;  %s57_s12 = sshll.u32 %s2810_s11, 4  ;;  %s36_s10 = int_to_ptr.vmem [resolvable:$true] %s35_s10  ;;  %s58_s12 = int_to_ptr.vmem [resolvable:$true] %s57_s12 }
   0x5   :  { %s2669_s15 = scalar_lea.hbm %s2995_s1, 128 }
   0x6   :  { %p2670_p0 = scmp.ne.s32.totalorder %s2995_s1, %s2669_s15  ;;  %p2673_p1 = scmp.lt.u32.totalorder %s2669_s15, %s2995_s1 }
   0x8   :  { %p2675_p2 = pnand %p2673_p1, %p2670_p0 }
   0xa   :  { %2678 = shalt.err (!%p2675_p2)
}
   0xb   :  { %s2679_s20 = scalar_lea.vmem %s36_s10, 128  ;;  %p2684_p4 = scmp.lt.s32.totalorder %s36_s10, %s36_s10 }
   0xc   :  { %p2680_p3 = scmp.ne.s32.totalorder %s36_s10, %s2679_s20  ;;  %p2685_p5 = scmp.lt.s32.totalorder %s2679_s20, %s2679_s20 }
   0xe   :  { %p2686_p6 = por %p2685_p5, %p2684_p4 }
  0x10   :  { %p2687_p7 = pnand %p2686_p6, %p2680_p3 }
  0x12   :  { %2690 = shalt.err (!%p2687_p7)
}
  0x13   :  { %38 = dma.hbm_to_vmem [thread:$0]  %s2995_s1, 128, %s36_s10, [#allocation6]  }
  0x14   :  { %s2691_s25 = scalar_lea.hbm %s2997_s3, 256 }
  0x15   :  { %p2692_p8 = scmp.ne.s32.totalorder %s2997_s3, %s2691_s25  ;;  %p2695_p9 = scmp.lt.u32.totalorder %s2691_s25, %s2997_s3 }
  0x17   :  { %p2697_p10 = pnand %p2695_p9, %p2692_p8 }
  0x19   :  { %2700 = shalt.err (!%p2697_p10)
}
  0x1a   :  { %s2701_s30 = scalar_lea.vmem %s58_s12, 256  ;;  %p2706_p12 = scmp.lt.s32.totalorder %s58_s12, %s58_s12 }
  0x1b   :  { %p2702_p11 = scmp.ne.s32.totalorder %s58_s12, %s2701_s30  ;;  %p2707_p13 = scmp.lt.s32.totalorder %s2701_s30, %s2701_s30 }
  0x1d   :  { %p2708_p0 = por %p2707_p13, %p2706_p12 }
  0x1f   :  { %p2709_p1 = pnand %p2708_p0, %p2702_p11 }
  0x21   :  { %2712 = shalt.err (!%p2709_p1)
}
  0x22   :  { %60 = dma.hbm_to_vmem [thread:$0]  %s2997_s3, 256, %s58_s12, [#allocation9]  }
  0x23   :  { %s2811_s11 = smov [#allocation3]   ;;  %s2812_s14 = smov [#allocation7]  }
  0x24   :  { %s25_s13 = sshll.u32 %s2811_s11, 4  ;;  %s44_s15 = sshll.u32 %s2812_s14, 4  ;;  %s26_s13 = int_to_ptr.vmem [resolvable:$true] %s25_s13  ;;  %s2894_s15 = int_to_ptr.vmem [resolvable:$true] %s44_s15 }
  0x25   :  { %s2713_s18 = scalar_lea.hbm %s2994_s0, 256 }
  0x26   :  { %p2714_p2 = scmp.ne.s32.totalorder %s2994_s0, %s2713_s18  ;;  %p2717_p3 = scmp.lt.u32.totalorder %s2713_s18, %s2994_s0 }
  0x28   :  { %p2719_p4 = pnand %p2717_p3, %p2714_p2 }
  0x2a   :  { %2722 = shalt.err (!%p2719_p4)
}
  0x2b   :  { %s2723_s3 = scalar_lea.vmem %s26_s13, 256  ;;  %p2728_p6 = scmp.lt.s32.totalorder %s26_s13, %s26_s13 }
  0x2c   :  { %p2724_p5 = scmp.ne.s32.totalorder %s26_s13, %s2723_s3  ;;  %p2729_p7 = scmp.lt.s32.totalorder %s2723_s3, %s2723_s3 }
  0x2e   :  { %p2730_p8 = por %p2729_p7, %p2728_p6 }
  0x30   :  { %p2731_p9 = pnand %p2730_p8, %p2724_p5 }
  0x32   :  { %2734 = shalt.err (!%p2731_p9)
}
  0x33   :  { %28 = dma.hbm_to_vmem [thread:$0]  %s2994_s0, 256, %s26_s13, [#allocation4]  }
  0x34   :  { %s2735_s26 = scalar_lea.hbm %s2996_s2, 8192 }
  0x35   :  { %p2736_p10 = scmp.ne.s32.totalorder %s2996_s2, %s2735_s26  ;;  %p2739_p11 = scmp.lt.u32.totalorder %s2735_s26, %s2996_s2 }
  0x37   :  { %p2741_p12 = pnand %p2739_p11, %p2736_p10 }
  0x39   :  { %2744 = shalt.err (!%p2741_p12)
}
  0x3a   :  { %s2745_s1 = scalar_lea.vmem %s2894_s15, 8192  ;;  %p2750_p0 = scmp.lt.s32.totalorder %s2894_s15, %s2894_s15 }
  0x3b   :  { %p2746_p13 = scmp.ne.s32.totalorder %s2894_s15, %s2745_s1  ;;  %p2751_p1 = scmp.lt.s32.totalorder %s2745_s1, %s2745_s1 }
  0x3d   :  { %p2752_p2 = por %p2751_p1, %p2750_p0 }
  0x3f   :  { %p2753_p3 = pnand %p2752_p2, %p2746_p13 }
  0x41   :  { %2756 = shalt.err (!%p2753_p3)
}
  0x42   :  { %s2813_s0 = smov 256   ;;  %s2814_s10 = smov 16  }
  0x43   :  { %50 = dma.hbm_to_vmem [thread:$0]  %s2996_s2, 8192, %s2894_s15, [#allocation6], %s2813_s0, %s2813_s0, %s2814_s10  }
  0x44   :  { %s2815_s14 = smov [#allocation10]   ;;  %s2816_s17 = smov [#allocation11]  }
  0x45   :  { %s68_s16 = sshll.u32 %s2815_s14, 4  ;;  %s82_s18 = sshll.u32 %s2816_s17, 4  ;;  %s69_s16 = int_to_ptr.vmem [resolvable:$true] %s68_s16  ;;  %s2925_s18 = int_to_ptr.vmem [resolvable:$true] %s82_s18 }
  0x46   :  { %s2757_s21 = scalar_lea.hbm %s2999_s5, 16384 }
  0x47   :  { %p2758_p4 = scmp.ne.s32.totalorder %s2999_s5, %s2757_s21  ;;  %p2761_p5 = scmp.lt.u32.totalorder %s2757_s21, %s2999_s5 }
  0x49   :  { %p2763_p6 = pnand %p2761_p5, %p2758_p4 }
  0x4b   :  { %2766 = shalt.err (!%p2763_p6)
}
  0x4c   :  { %s2767_s2 = scalar_lea.vmem %s69_s16, 16384  ;;  %p2772_p8 = scmp.lt.s32.totalorder %s69_s16, %s69_s16 }
  0x4d   :  { %p2768_p7 = scmp.ne.s32.totalorder %s69_s16, %s2767_s2  ;;  %p2773_p9 = scmp.lt.s32.totalorder %s2767_s2, %s2767_s2 }
  0x4f   :  { %p2774_p10 = por %p2773_p9, %p2772_p8 }
  0x51   :  { %p2775_p11 = pnand %p2774_p10, %p2768_p7 }
  0x53   :  { %2778 = shalt.err (!%p2775_p11)
}
  0x54   :  { %74 = dma.hbm_to_vmem [thread:$0]  %s2999_s5, 16384, %s69_s16, [#allocation9], %s2813_s0, %s2813_s0, %s2814_s10  }
  0x55   :  { %s2779_s27 = scalar_lea.hbm %s3001_s7, 4096 }
  0x56   :  { %p2780_p12 = scmp.ne.s32.totalorder %s3001_s7, %s2779_s27  ;;  %p2783_p13 = scmp.lt.u32.totalorder %s2779_s27, %s3001_s7 }
  0x58   :  { %p2785_p0 = pnand %p2783_p13, %p2780_p12 }
  0x5a   :  { %2788 = shalt.err (!%p2785_p0)
}
  0x5b   :  { %s2789_s11 = scalar_lea.vmem %s2925_s18, 4096  ;;  %p2794_p2 = scmp.lt.s32.totalorder %s2925_s18, %s2925_s18 }
  0x5c   :  { %p2790_p1 = scmp.ne.s32.totalorder %s2925_s18, %s2789_s11  ;;  %p2795_p3 = scmp.lt.s32.totalorder %s2789_s11, %s2789_s11 }
  0x5e   :  { %p2796_p4 = por %p2795_p3, %p2794_p2 }
  0x60   :  { %p2797_p5 = pnand %p2796_p4, %p2790_p1 }
  0x62   :  { %2800 = shalt.err (!%p2797_p5)
}
  0x63   :  { %s2817_s5 = smov 64   ;;  %s2818_s0 = smov 4  }
  0x64   :  { %88 = dma.hbm_to_vmem [thread:$0]  %s3001_s7, 4096, %s2925_s18, [#allocation12], %s2817_s5, %s2817_s5, %s2818_s0  }
  0x65   :  { %2801 = dma.done.wait [#allocation4], 256  }
  0x66   :  { %2802 = vsyncadd [#allocation4], 4294967040 }
  0x67   :  { %2803 = dma.done.wait [#allocation6], 8320  }
  0x68   :  { %2804 = vsyncadd [#allocation6], 4294958976 }
  0x69   :  { %2805 = dma.done.wait [#allocation9], 16640  }
  0x6a   :  { %2806 = vsyncadd [#allocation9], 4294950656 }
  0x6b   :  { %2807 = dma.done.wait [#allocation12], 4096  }
  0x6c   :  { %2808 = vsyncadd [#allocation12], 4294963200  ;;  %v2819_v0 = vmov 0   ;;  %v180_v1 = vld [vmem:[#allocation8] sm:$0xff]  ;;  %vm196_vm0 = vcmask 1043456   ;;  %v181_v2 = vld [vmem:[#allocation8 + $0x8] sm:$0xff] }
  0x6d   :  { %241 = vmatprep.mubr.bf16.mxu0 %v2819_v0  ;;  %282 = vmatprep.mubr.bf16.mxu1 %v2819_v0  ;;  %v114_v3 = vld [vmem:[#allocation5] sm:$0xff]  ;;  %v2047_v4 = vcombine.high %v180_v1, %v180_v1  ;;  %v2049_v5 = vcombine.high %v181_v2, %v181_v2  ;;  %v2046_v6 = vcombine.low %v180_v1, %v180_v1  ;;  %v2351_v8 = vld [vmem:[#allocation7 + $0x4] ss:$16 sps:$4 sm:$0xff]   ;;  %v2349_v12 = vld [vmem:[#allocation7] ss:$16 sps:$4 sm:$0xff]   ;;  %vm192_vm1 = vcmask 64512  }
  0x6e   :  { %v2048_v7 = vcombine.low %v181_v2, %v181_v2  ;;  %v115_v11 = vpack.c.bf16 %v114_v3, %v114_v3  ;;  %v2354_v13 = vld [vmem:[#allocation7 + $0xc] ss:$16 sps:$4 sm:$0xff]   ;;  %v2352_v14 = vld [vmem:[#allocation7 + $0x8] ss:$16 sps:$4 sm:$0xff]   ;;  %v2357_v15 = vld [vmem:[#allocation7 + $0x24] ss:$16 sps:$4 sm:$0xff]  }
  0x6f   :  { %2050 = vmatprep.subr.msk.bf16.mxu0 %vm196_vm0, %v2047_v4  ;;  %2052 = vmatprep.subr.msk.bf16.mxu1 %vm196_vm0, %v2049_v5  ;;  %v198_v9 = vsel %vm196_vm0, %v2046_v6, 0  ;;  %v2360_v16 = vld [vmem:[#allocation7 + $0x2c] ss:$16 sps:$4 sm:$0xff]   ;;  %v2355_v17 = vld [vmem:[#allocation7 + $0x20] ss:$16 sps:$4 sm:$0xff]   ;;  %vm2036_vm2 = vcmask 7168  }
  0x70   :  { %v204_v10 = vsel %vm196_vm0, %v2048_v7, 0  ;;  %210 = vmatpush1.bf16.msra.mxu0 %v198_v9  ;;  %v2358_v18 = vld [vmem:[#allocation7 + $0x28] ss:$16 sps:$4 sm:$0xff]   ;;  %v2363_v19 = vld [vmem:[#allocation7 + $0x44] ss:$16 sps:$4 sm:$0xff]  }
  0x71   :  { %251 = vmatpush1.bf16.msra.mxu1 %v204_v10  ;;  %611 = vmatprep.subr.bf16.mxu0 %v2351_v8  ;;  %v2366_v20 = vld [vmem:[#allocation7 + $0x4c] ss:$16 sps:$4 sm:$0xff]   ;;  %v2361_v21 = vld [vmem:[#allocation7 + $0x40] ss:$16 sps:$4 sm:$0xff]   ;;  %v2364_v22 = vld [vmem:[#allocation7 + $0x48] ss:$16 sps:$4 sm:$0xff]  }
  0x72   :  { %652 = vmatprep.subr.bf16.mxu1 %v2354_v13  ;;  %v2369_v23 = vld [vmem:[#allocation7 + $0x64] ss:$16 sps:$4 sm:$0xff]   ;;  %v2372_v24 = vld [vmem:[#allocation7 + $0x6c] ss:$16 sps:$4 sm:$0xff]   ;;  %v2367_v25 = vld [vmem:[#allocation7 + $0x60] ss:$16 sps:$4 sm:$0xff]  }
  0x73   :  { %2051 = vmatmul.mubr.msk.bf16.vlgmr.msra.gmra.mrb[0].mxu0 %vm192_vm1, %v115_v11  ;;  %v2370_v26 = vld [vmem:[#allocation7 + $0x68] ss:$16 sps:$4 sm:$0xff]   ;;  %v2375_v27 = vld [vmem:[#allocation7 + $0x84] ss:$16 sps:$4 sm:$0xff]   ;;  %v2378_v28 = vld [vmem:[#allocation7 + $0x8c] ss:$16 sps:$4 sm:$0xff]  }
  0x74   :  { %2053 = vmatmul.mubr.msk.bf16.vlgmr.msra.gmra.mrb[0].mxu1 %vm192_vm1, %v115_v11  ;;  %612 = vmatpush1.bf16.msra.mxu0 %v2349_v12  ;;  %v2373_v29 = vld [vmem:[#allocation7 + $0x80] ss:$16 sps:$4 sm:$0xff]   ;;  %v2376_v30 = vld [vmem:[#allocation7 + $0x88] ss:$16 sps:$4 sm:$0xff]   ;;  %v2381_v31 = vld [vmem:[#allocation7 + $0xa4] ss:$16 sps:$4 sm:$0xff]  }
  0x75   :  { %653 = vmatpush1.bf16.msra.mxu1 %v2352_v14  ;;  %613 = vmatprep.subr.bf16.mxu0 %v2357_v15  ;;  %v2384_v32 = vld [vmem:[#allocation7 + $0xac] ss:$16 sps:$4 sm:$0xff]   ;;  %v2379_v33 = vld [vmem:[#allocation7 + $0xa0] ss:$16 sps:$4 sm:$0xff]   ;;  %v2382_v34 = vld [vmem:[#allocation7 + $0xa8] ss:$16 sps:$4 sm:$0xff]  }
  0x76   :  { %654 = vmatprep.subr.bf16.mxu1 %v2360_v16  ;;  %v2387_v35 = vld [vmem:[#allocation7 + $0xc4] ss:$16 sps:$4 sm:$0xff]   ;;  %v2390_v36 = vld [vmem:[#allocation7 + $0xcc] ss:$16 sps:$4 sm:$0xff]   ;;  %v2385_v37 = vld [vmem:[#allocation7 + $0xc0] ss:$16 sps:$4 sm:$0xff]  }
  0x77   :  { %v2388_v38 = vld [vmem:[#allocation7 + $0xc8] ss:$16 sps:$4 sm:$0xff]   ;;  %v2393_v39 = vld [vmem:[#allocation7 + $0xe4] ss:$16 sps:$4 sm:$0xff]   ;;  %v2396_v40 = vld [vmem:[#allocation7 + $0xec] ss:$16 sps:$4 sm:$0xff]  }
  0x78   :  { %614 = vmatpush1.bf16.msra.mxu0 %v2355_v17  ;;  %v2391_v41 = vld [vmem:[#allocation7 + $0xe0] ss:$16 sps:$4 sm:$0xff]   ;;  %v2394_v42 = vld [vmem:[#allocation7 + $0xe8] ss:$16 sps:$4 sm:$0xff]   ;;  %v2399_v43 = vld [vmem:[#allocation7 + $0x104] ss:$16 sps:$4 sm:$0xff]  }
  0x79   :  { %655 = vmatpush1.bf16.msra.mxu1 %v2358_v18  ;;  %615 = vmatprep.subr.bf16.mxu0 %v2363_v19  ;;  %v2402_v44 = vld [vmem:[#allocation7 + $0x10c] ss:$16 sps:$4 sm:$0xff]   ;;  %v2397_v45 = vld [vmem:[#allocation7 + $0x100] ss:$16 sps:$4 sm:$0xff]   ;;  %v2400_v46 = vld [vmem:[#allocation7 + $0x108] ss:$16 sps:$4 sm:$0xff]  }
  0x7a   :  { %656 = vmatprep.subr.bf16.mxu1 %v2366_v20  ;;  %v2405_v47 = vld [vmem:[#allocation7 + $0x124] ss:$16 sps:$4 sm:$0xff]   ;;  %v2408_v48 = vld [vmem:[#allocation7 + $0x12c] ss:$16 sps:$4 sm:$0xff]   ;;  %v2403_v49 = vld [vmem:[#allocation7 + $0x120] ss:$16 sps:$4 sm:$0xff]  }
  0x7b   :  { %v2406_v50 = vld [vmem:[#allocation7 + $0x128] ss:$16 sps:$4 sm:$0xff]   ;;  %v2411_v51 = vld [vmem:[#allocation7 + $0x144] ss:$16 sps:$4 sm:$0xff]   ;;  %v2414_v52 = vld [vmem:[#allocation7 + $0x14c] ss:$16 sps:$4 sm:$0xff]  }
  0x7c   :  { %616 = vmatpush1.bf16.msra.mxu0 %v2361_v21  ;;  %v2409_v53 = vld [vmem:[#allocation7 + $0x140] ss:$16 sps:$4 sm:$0xff]   ;;  %v2412_v54 = vld [vmem:[#allocation7 + $0x148] ss:$16 sps:$4 sm:$0xff]   ;;  %v2417_v55 = vld [vmem:[#allocation7 + $0x164] ss:$16 sps:$4 sm:$0xff]  }
  0x7d   :  { %657 = vmatpush1.bf16.msra.mxu1 %v2364_v22  ;;  %617 = vmatprep.subr.bf16.mxu0 %v2369_v23  ;;  %v2420_v56 = vld [vmem:[#allocation7 + $0x16c] ss:$16 sps:$4 sm:$0xff]   ;;  %v111_v57 = vld [vmem:[#allocation3 + $0x8] sm:$0xff]  ;;  %v2418_v60 = vld [vmem:[#allocation7 + $0x168] ss:$16 sps:$4 sm:$0xff]  }
  0x7e   :  { %658 = vmatprep.subr.bf16.mxu1 %v2372_v24  ;;  %v113_v58 = vpack.c.bf16 %v111_v57, %v111_v57  ;;  %v2415_v59 = vld [vmem:[#allocation7 + $0x160] ss:$16 sps:$4 sm:$0xff]   ;;  %v2423_v61 = vld [vmem:[#allocation7 + $0x184] ss:$16 sps:$4 sm:$0xff]   ;;  %v2426_v62 = vld [vmem:[#allocation7 + $0x18c] ss:$16 sps:$4 sm:$0xff]  }
  0x7f   :  { %v2421_v63 = vld [vmem:[#allocation7 + $0x180] ss:$16 sps:$4 sm:$0xff]   ;;  %v2424_v0 = vld [vmem:[#allocation7 + $0x188] ss:$16 sps:$4 sm:$0xff]   ;;  %v2429_v1 = vld [vmem:[#allocation7 + $0x1a4] ss:$16 sps:$4 sm:$0xff]  }
  0x80   :  { %618 = vmatpush1.bf16.msra.mxu0 %v2367_v25  ;;  %643 = vmatprep.mubr.bf16.mxu0 %v113_v58  ;;  %v2432_v2 = vld [vmem:[#allocation7 + $0x1ac] ss:$16 sps:$4 sm:$0xff]   ;;  %v2427_v3 = vld [vmem:[#allocation7 + $0x1a0] ss:$16 sps:$4 sm:$0xff]   ;;  %v2430_v4 = vld [vmem:[#allocation7 + $0x1a8] ss:$16 sps:$4 sm:$0xff]  }
  0x81   :  { %659 = vmatpush1.bf16.msra.mxu1 %v2370_v26  ;;  %619 = vmatprep.subr.bf16.mxu0 %v2375_v27  ;;  %v2435_v5 = vld [vmem:[#allocation7 + $0x1c4] ss:$16 sps:$4 sm:$0xff]   ;;  %v2438_v6 = vld [vmem:[#allocation7 + $0x1cc] ss:$16 sps:$4 sm:$0xff]   ;;  %v2433_v7 = vld [vmem:[#allocation7 + $0x1c0] ss:$16 sps:$4 sm:$0xff]  }
  0x82   :  { %660 = vmatprep.subr.bf16.mxu1 %v2378_v28  ;;  %684 = vmatprep.mubr.bf16.mxu1 %v113_v58  ;;  %v2436_v8 = vld [vmem:[#allocation7 + $0x1c8] ss:$16 sps:$4 sm:$0xff]   ;;  %v2441_v9 = vld [vmem:[#allocation7 + $0x1e4] ss:$16 sps:$4 sm:$0xff]   ;;  %v2444_v10 = vld [vmem:[#allocation7 + $0x1ec] ss:$16 sps:$4 sm:$0xff]  }
  0x83   :  { %v2439_v11 = vld [vmem:[#allocation7 + $0x1e0] ss:$16 sps:$4 sm:$0xff]   ;;  %v2442_v12 = vld [vmem:[#allocation7 + $0x1e8] ss:$16 sps:$4 sm:$0xff]   ;;  %v2447_v16 = vld [vmem:[#allocation10 + $0x4] ss:$16 sps:$4 sm:$0xff]  }
  0x84   :  { %620 = vmatpush1.bf16.msra.mxu0 %v2373_v29  ;;  %v110_v13 = vld [vmem:[#allocation3] sm:$0xff]  ;;  %v2445_v15 = vld [vmem:[#allocation10] ss:$16 sps:$4 sm:$0xff]   ;;  %v2453_v19 = vld [vmem:[#allocation10 + $0x24] ss:$16 sps:$4 sm:$0xff]  }
  0x85   :  { %661 = vmatpush1.bf16.msra.mxu1 %v2376_v30  ;;  %621 = vmatprep.subr.bf16.mxu0 %v2381_v31  ;;  %v112_v14 = vpack.c.bf16 %v110_v13, %v110_v13  ;;  %v2448_v17 = vld [vmem:[#allocation10 + $0x8] ss:$16 sps:$4 sm:$0xff]   ;;  %v2450_v18 = vld [vmem:[#allocation10 + $0xc] ss:$16 sps:$4 sm:$0xff]   ;;  %v2451_v21 = vld [vmem:[#allocation10 + $0x20] ss:$16 sps:$4 sm:$0xff]  }
  0x86   :  { %662 = vmatprep.subr.bf16.mxu1 %v2384_v32  ;;  %v2456_v20 = vld [vmem:[#allocation10 + $0x2c] ss:$16 sps:$4 sm:$0xff]   ;;  %v2454_v22 = vld [vmem:[#allocation10 + $0x28] ss:$16 sps:$4 sm:$0xff]   ;;  %v2459_v23 = vld [vmem:[#allocation10 + $0x44] ss:$16 sps:$4 sm:$0xff]  }
  0x87   :  { %v2462_v24 = vld [vmem:[#allocation10 + $0x4c] ss:$16 sps:$4 sm:$0xff]   ;;  %v2457_v25 = vld [vmem:[#allocation10 + $0x40] ss:$16 sps:$4 sm:$0xff]   ;;  %v2460_v26 = vld [vmem:[#allocation10 + $0x48] ss:$16 sps:$4 sm:$0xff]  }
  0x88   :  { %622 = vmatpush1.bf16.msra.mxu0 %v2379_v33  ;;  %v2465_v27 = vld [vmem:[#allocation10 + $0x64] ss:$16 sps:$4 sm:$0xff]   ;;  %v2468_v28 = vld [vmem:[#allocation10 + $0x6c] ss:$16 sps:$4 sm:$0xff]   ;;  %v2463_v29 = vld [vmem:[#allocation10 + $0x60] ss:$16 sps:$4 sm:$0xff]  }
  0x89   :  { %663 = vmatpush1.bf16.msra.mxu1 %v2382_v34  ;;  %623 = vmatprep.subr.bf16.mxu0 %v2387_v35  ;;  %v2466_v30 = vld [vmem:[#allocation10 + $0x68] ss:$16 sps:$4 sm:$0xff]   ;;  %v2471_v31 = vld [vmem:[#allocation10 + $0x84] ss:$16 sps:$4 sm:$0xff]   ;;  %v2474_v32 = vld [vmem:[#allocation10 + $0x8c] ss:$16 sps:$4 sm:$0xff]  }
  0x8a   :  { %664 = vmatprep.subr.bf16.mxu1 %v2390_v36  ;;  %v2469_v33 = vld [vmem:[#allocation10 + $0x80] ss:$16 sps:$4 sm:$0xff]   ;;  %v2472_v34 = vld [vmem:[#allocation10 + $0x88] ss:$16 sps:$4 sm:$0xff]   ;;  %v2477_v35 = vld [vmem:[#allocation10 + $0xa4] ss:$16 sps:$4 sm:$0xff]  }
  0x8b   :  { %v2475_v36 = vld [vmem:[#allocation10 + $0xa0] ss:$16 sps:$4 sm:$0xff]   ;;  %v2508_v58 = vld [vmem:[#allocation10 + $0x148] ss:$16 sps:$4 sm:$0xff]  }
  0x8c   :  { %624 = vmatpush1.bf16.msra.mxu0 %v2385_v37  ;;  %v2480_v37 = vld [vmem:[#allocation10 + $0xac] ss:$16 sps:$4 sm:$0xff]   ;;  %v2505_v57 = vld [vmem:[#allocation10 + $0x140] ss:$16 sps:$4 sm:$0xff]  }
  0x8d   :  { %665 = vmatpush1.bf16.msra.mxu1 %v2388_v38  ;;  %625 = vmatprep.subr.bf16.mxu0 %v2393_v39  ;;  %v2478_v38 = vld [vmem:[#allocation10 + $0xa8] ss:$16 sps:$4 sm:$0xff]   ;;  %v2483_v39 = vld [vmem:[#allocation10 + $0xc4] ss:$16 sps:$4 sm:$0xff]   ;;  %v2535_v13 = vld [vmem:[#allocation10 + $0x1e0] ss:$16 sps:$4 sm:$0xff]  }
  0x8e   :  { %666 = vmatprep.subr.bf16.mxu1 %v2396_v40  ;;  %v2486_v40 = vld [vmem:[#allocation10 + $0xcc] ss:$16 sps:$4 sm:$0xff]  }
  0x90   :  { %626 = vmatpush1.bf16.msra.mxu0 %v2391_v41  ;;  %v2481_v41 = vld [vmem:[#allocation10 + $0xc0] ss:$16 sps:$4 sm:$0xff]  }
  0x91   :  { %667 = vmatpush1.bf16.msra.mxu1 %v2394_v42  ;;  %627 = vmatprep.subr.bf16.mxu0 %v2399_v43  ;;  %v2484_v42 = vld [vmem:[#allocation10 + $0xc8] ss:$16 sps:$4 sm:$0xff]   ;;  %v2489_v43 = vld [vmem:[#allocation10 + $0xe4] ss:$16 sps:$4 sm:$0xff]  }
  0x92   :  { %668 = vmatprep.subr.bf16.mxu1 %v2402_v44  ;;  %v2492_v44 = vld [vmem:[#allocation10 + $0xec] ss:$16 sps:$4 sm:$0xff]  }
  0x94   :  { %628 = vmatpush1.bf16.msra.mxu0 %v2397_v45  ;;  %v2487_v45 = vld [vmem:[#allocation10 + $0xe0] ss:$16 sps:$4 sm:$0xff]  }
  0x95   :  { %669 = vmatpush1.bf16.msra.mxu1 %v2400_v46  ;;  %629 = vmatprep.subr.bf16.mxu0 %v2405_v47  ;;  %v2490_v46 = vld [vmem:[#allocation10 + $0xe8] ss:$16 sps:$4 sm:$0xff]   ;;  %v2495_v47 = vld [vmem:[#allocation10 + $0x104] ss:$16 sps:$4 sm:$0xff]  }
  0x96   :  { %670 = vmatprep.subr.bf16.mxu1 %v2408_v48  ;;  %v2498_v48 = vld [vmem:[#allocation10 + $0x10c] ss:$16 sps:$4 sm:$0xff]  }
  0x98   :  { %630 = vmatpush1.bf16.msra.mxu0 %v2403_v49  ;;  %v2493_v49 = vld [vmem:[#allocation10 + $0x100] ss:$16 sps:$4 sm:$0xff]  }
  0x99   :  { %671 = vmatpush1.bf16.msra.mxu1 %v2406_v50  ;;  %631 = vmatprep.subr.bf16.mxu0 %v2411_v51  ;;  %v2496_v50 = vld [vmem:[#allocation10 + $0x108] ss:$16 sps:$4 sm:$0xff]   ;;  %v2501_v51 = vld [vmem:[#allocation10 + $0x124] ss:$16 sps:$4 sm:$0xff]  }
  0x9a   :  { %672 = vmatprep.subr.bf16.mxu1 %v2414_v52  ;;  %v2504_v52 = vld [vmem:[#allocation10 + $0x12c] ss:$16 sps:$4 sm:$0xff]  }
  0x9c   :  { %632 = vmatpush1.bf16.msra.mxu0 %v2409_v53  ;;  %v2499_v53 = vld [vmem:[#allocation10 + $0x120] ss:$16 sps:$4 sm:$0xff]  }
  0x9d   :  { %673 = vmatpush1.bf16.msra.mxu1 %v2412_v54  ;;  %633 = vmatprep.subr.bf16.mxu0 %v2417_v55  ;;  %v2502_v54 = vld [vmem:[#allocation10 + $0x128] ss:$16 sps:$4 sm:$0xff]   ;;  %v2507_v55 = vld [vmem:[#allocation10 + $0x144] ss:$16 sps:$4 sm:$0xff]  }
  0x9e   :  { %674 = vmatprep.subr.bf16.mxu1 %v2420_v56  ;;  %v2510_v56 = vld [vmem:[#allocation10 + $0x14c] ss:$16 sps:$4 sm:$0xff]  }
  0xa0   :  { %634 = vmatpush1.bf16.msra.mxu0 %v2415_v59  ;;  %v2513_v59 = vld [vmem:[#allocation10 + $0x164] ss:$16 sps:$4 sm:$0xff]  }
  0xa1   :  { %675 = vmatpush1.bf16.msra.mxu1 %v2418_v60  ;;  %635 = vmatprep.subr.bf16.mxu0 %v2423_v61  ;;  %v2516_v60 = vld [vmem:[#allocation10 + $0x16c] ss:$16 sps:$4 sm:$0xff]   ;;  %v2511_v61 = vld [vmem:[#allocation10 + $0x160] ss:$16 sps:$4 sm:$0xff]  }
  0xa2   :  { %676 = vmatprep.subr.bf16.mxu1 %v2426_v62  ;;  %v2514_v62 = vld [vmem:[#allocation10 + $0x168] ss:$16 sps:$4 sm:$0xff]  }
  0xa4   :  { %636 = vmatpush1.bf16.msra.mxu0 %v2421_v63  ;;  %v2519_v63 = vld [vmem:[#allocation10 + $0x184] ss:$16 sps:$4 sm:$0xff]  }
  0xa5   :  { %677 = vmatpush1.bf16.msra.mxu1 %v2424_v0  ;;  %637 = vmatprep.subr.bf16.mxu0 %v2429_v1  ;;  %v2522_v0 = vld [vmem:[#allocation10 + $0x18c] ss:$16 sps:$4 sm:$0xff]   ;;  %v2517_v1 = vld [vmem:[#allocation10 + $0x180] ss:$16 sps:$4 sm:$0xff]  }
  0xa6   :  { %678 = vmatprep.subr.bf16.mxu1 %v2432_v2  ;;  %v2520_v2 = vld [vmem:[#allocation10 + $0x188] ss:$16 sps:$4 sm:$0xff]  }
  0xa8   :  { %638 = vmatpush1.bf16.msra.mxu0 %v2427_v3  ;;  %v2525_v3 = vld [vmem:[#allocation10 + $0x1a4] ss:$16 sps:$4 sm:$0xff]  }
  0xa9   :  { %679 = vmatpush1.bf16.msra.mxu1 %v2430_v4  ;;  %639 = vmatprep.subr.bf16.mxu0 %v2435_v5  ;;  %v2528_v4 = vld [vmem:[#allocation10 + $0x1ac] ss:$16 sps:$4 sm:$0xff]   ;;  %v2523_v5 = vld [vmem:[#allocation10 + $0x1a0] ss:$16 sps:$4 sm:$0xff]  }
  0xaa   :  { %680 = vmatprep.subr.bf16.mxu1 %v2438_v6  ;;  %v2526_v6 = vld [vmem:[#allocation10 + $0x1a8] ss:$16 sps:$4 sm:$0xff]  }
  0xac   :  { %640 = vmatpush1.bf16.msra.mxu0 %v2433_v7  ;;  %v2531_v7 = vld [vmem:[#allocation10 + $0x1c4] ss:$16 sps:$4 sm:$0xff]  }
  0xad   :  { %681 = vmatpush1.bf16.msra.mxu1 %v2436_v8  ;;  %641 = vmatprep.subr.bf16.mxu0 %v2441_v9  ;;  %v2534_v8 = vld [vmem:[#allocation10 + $0x1cc] ss:$16 sps:$4 sm:$0xff]   ;;  %v2529_v9 = vld [vmem:[#allocation10 + $0x1c0] ss:$16 sps:$4 sm:$0xff]  }
  0xae   :  { %682 = vmatprep.subr.bf16.mxu1 %v2444_v10  ;;  %v2532_v10 = vld [vmem:[#allocation10 + $0x1c8] ss:$16 sps:$4 sm:$0xff]  }
  0xb0   :  { %642 = vmatpush1.bf16.msra.mxu0 %v2439_v11  ;;  %v2537_v11 = vld [vmem:[#allocation10 + $0x1e4] ss:$16 sps:$4 sm:$0xff]  }
  0xb1   :  { %683 = vmatpush1.bf16.msra.mxu1 %v2442_v12  ;;  %1521 = vmatprep.subr.bf16.mxu0 %v2447_v16  ;;  %v2540_v12 = vld [vmem:[#allocation10 + $0x1ec] ss:$16 sps:$4 sm:$0xff]  }
  0xb2   :  { %1603 = vmatprep.subr.bf16.mxu1 %v2450_v18  ;;  %v2546_v16 = vld [vmem:[#allocation10 + $0x20c] ss:$16 sps:$4 sm:$0xff]  }
  0xb3   :  { %644 = vmatmul.mubr.bf16.vlgmr.msra.gmra.mrb[4].mxu0 %v112_v14 }
  0xb4   :  { %685 = vmatmul.mubr.bf16.vlgmr.msra.gmra.mrb[4].mxu1 %v112_v14  ;;  %1522 = vmatpush1.bf16.msra.mxu0 %v2445_v15  ;;  %v2538_v14 = vld [vmem:[#allocation10 + $0x1e8] ss:$16 sps:$4 sm:$0xff]   ;;  %v2543_v15 = vld [vmem:[#allocation10 + $0x204] ss:$16 sps:$4 sm:$0xff]  }
  0xb5   :  { %1604 = vmatpush1.bf16.msra.mxu1 %v2448_v17  ;;  %1523 = vmatprep.subr.bf16.mxu0 %v2453_v19 }
  0xb6   :  { %1605 = vmatprep.subr.bf16.mxu1 %v2456_v20 }
  0xb8   :  { %1524 = vmatpush1.bf16.msra.mxu0 %v2451_v21 }
  0xb9   :  { %1606 = vmatpush1.bf16.msra.mxu1 %v2454_v22  ;;  %1525 = vmatprep.subr.bf16.mxu0 %v2459_v23 }
  0xba   :  { %1607 = vmatprep.subr.bf16.mxu1 %v2462_v24 }
  0xbc   :  { %1526 = vmatpush1.bf16.msra.mxu0 %v2457_v25  ;;  %v695_v25 = vlaneseq }
  0xbd   :  { %1608 = vmatpush1.bf16.msra.mxu1 %v2460_v26  ;;  %1527 = vmatprep.subr.bf16.mxu0 %v2465_v27 }
  0xbe   :  { %1609 = vmatprep.subr.bf16.mxu1 %v2468_v28  ;;  %v2956_v26 = vshrl.u32 %v695_v25, 7  ;;  %v2583_v25 = vld [vmem:[#allocation10 + $0x2e0] ss:$16 sps:$4 sm:$0xff]  }
  0xc0   :  { %1528 = vmatpush1.bf16.msra.mxu0 %v2463_v29  ;;  %v697_v27 = vsub.s32 0, %v2956_v26  ;;  %v705_v28 = vsub.s32 2, %v2956_v26  ;;  %v693_v29 = vld [vmem:[%s2998_s4] sm:$0xf] }
  0xc1   :  { %1610 = vmatpush1.bf16.msra.mxu1 %v2466_v30  ;;  %1529 = vmatprep.subr.bf16.mxu0 %v2471_v31  ;;  %v701_v30 = vsub.s32 1, %v2956_v26  ;;  %v709_v31 = vsub.s32 3, %v2956_v26 }
  0xc2   :  { %1611 = vmatprep.subr.bf16.mxu1 %v2474_v32  ;;  %v698_v32 = vrot.slane %v693_v29, %v697_v27 }
  0xc4   :  { %1530 = vmatpush1.bf16.msra.mxu0 %v2469_v33  ;;  %v706_v33 = vrot.slane %v693_v29, %v705_v28 }
  0xc5   :  { %1612 = vmatpush1.bf16.msra.mxu1 %v2472_v34  ;;  %1531 = vmatprep.subr.bf16.mxu0 %v2477_v35 }
  0xc6   :  { %1613 = vmatprep.subr.bf16.mxu1 %v2480_v37  ;;  %v710_v37 = vrot.slane %v693_v29, %v709_v31 }
  0xc8   :  { %1532 = vmatpush1.bf16.msra.mxu0 %v2475_v36  ;;  %v702_v36 = vrot.slane %v693_v29, %v701_v30  ;;  %v2586_v29 = vld [vmem:[#allocation10 + $0x2e8] ss:$16 sps:$4 sm:$0xff]  }
  0xc9   :  { %1614 = vmatpush1.bf16.msra.mxu1 %v2478_v38  ;;  %1533 = vmatprep.subr.bf16.mxu0 %v2483_v39 }
  0xca   :  { %1615 = vmatprep.subr.bf16.mxu1 %v2486_v40 }
  0xcc   :  { %1534 = vmatpush1.bf16.msra.mxu0 %v2481_v41 }
  0xcd   :  { %1616 = vmatpush1.bf16.msra.mxu1 %v2484_v42  ;;  %1535 = vmatprep.subr.bf16.mxu0 %v2489_v43 }
  0xce   :  { %1617 = vmatprep.subr.bf16.mxu1 %v2492_v44 }
  0xd0   :  { %1536 = vmatpush1.bf16.msra.mxu0 %v2487_v45 }
  0xd1   :  { %1618 = vmatpush1.bf16.msra.mxu1 %v2490_v46  ;;  %1537 = vmatprep.subr.bf16.mxu0 %v2495_v47 }
  0xd2   :  { %1619 = vmatprep.subr.bf16.mxu1 %v2498_v48 }
  0xd4   :  { %1538 = vmatpush1.bf16.msra.mxu0 %v2493_v49 }
  0xd5   :  { %1620 = vmatpush1.bf16.msra.mxu1 %v2496_v50  ;;  %1539 = vmatprep.subr.bf16.mxu0 %v2501_v51 }
  0xd6   :  { %1621 = vmatprep.subr.bf16.mxu1 %v2504_v52 }
  0xd8   :  { %1540 = vmatpush1.bf16.msra.mxu0 %v2499_v53 }
  0xd9   :  { %1622 = vmatpush1.bf16.msra.mxu1 %v2502_v54  ;;  %1541 = vmatprep.subr.bf16.mxu0 %v2507_v55 }
  0xda   :  { %1623 = vmatprep.subr.bf16.mxu1 %v2510_v56 }
  0xdc   :  { %1542 = vmatpush1.bf16.msra.mxu0 %v2505_v57 }
  0xdd   :  { %1624 = vmatpush1.bf16.msra.mxu1 %v2508_v58  ;;  %1543 = vmatprep.subr.bf16.mxu0 %v2513_v59  ;;  %v2541_v59 = vld [vmem:[#allocation10 + $0x200] ss:$16 sps:$4 sm:$0xff]  }
  0xde   :  { %1625 = vmatprep.subr.bf16.mxu1 %v2516_v60  ;;  %v2544_v60 = vld [vmem:[#allocation10 + $0x208] ss:$16 sps:$4 sm:$0xff]  }
  0xe0   :  { %1544 = vmatpush1.bf16.msra.mxu0 %v2511_v61 }
  0xe1   :  { %1626 = vmatpush1.bf16.msra.mxu1 %v2514_v62  ;;  %1545 = vmatprep.subr.bf16.mxu0 %v2519_v63  ;;  %v2549_v62 = vld [vmem:[#allocation10 + $0x224] ss:$16 sps:$4 sm:$0xff]   ;;  %v2552_v63 = vld [vmem:[#allocation10 + $0x22c] ss:$16 sps:$4 sm:$0xff]  }
  0xe2   :  { %1627 = vmatprep.subr.bf16.mxu1 %v2522_v0 }
  0xe4   :  { %1546 = vmatpush1.bf16.msra.mxu0 %v2517_v1  ;;  %v2547_v1 = vld [vmem:[#allocation10 + $0x220] ss:$16 sps:$4 sm:$0xff]  }
  0xe5   :  { %1628 = vmatpush1.bf16.msra.mxu1 %v2520_v2  ;;  %1547 = vmatprep.subr.bf16.mxu0 %v2525_v3  ;;  %v2550_v2 = vld [vmem:[#allocation10 + $0x228] ss:$16 sps:$4 sm:$0xff]   ;;  %v2555_v3 = vld [vmem:[#allocation10 + $0x244] ss:$16 sps:$4 sm:$0xff]  }
  0xe6   :  { %1629 = vmatprep.subr.bf16.mxu1 %v2528_v4  ;;  %v2558_v4 = vld [vmem:[#allocation10 + $0x24c] ss:$16 sps:$4 sm:$0xff]  }
  0xe8   :  { %1548 = vmatpush1.bf16.msra.mxu0 %v2523_v5  ;;  %v2553_v5 = vld [vmem:[#allocation10 + $0x240] ss:$16 sps:$4 sm:$0xff]  }
  0xe9   :  { %1630 = vmatpush1.bf16.msra.mxu1 %v2526_v6  ;;  %1549 = vmatprep.subr.bf16.mxu0 %v2531_v7  ;;  %v2556_v6 = vld [vmem:[#allocation10 + $0x248] ss:$16 sps:$4 sm:$0xff]   ;;  %v2561_v7 = vld [vmem:[#allocation10 + $0x264] ss:$16 sps:$4 sm:$0xff]  }
  0xea   :  { %1631 = vmatprep.subr.bf16.mxu1 %v2534_v8  ;;  %v2564_v8 = vld [vmem:[#allocation10 + $0x26c] ss:$16 sps:$4 sm:$0xff]  }
  0xec   :  { %1550 = vmatpush1.bf16.msra.mxu0 %v2529_v9  ;;  %v2559_v9 = vld [vmem:[#allocation10 + $0x260] ss:$16 sps:$4 sm:$0xff]  }
  0xed   :  { %1632 = vmatpush1.bf16.msra.mxu1 %v2532_v10  ;;  %1551 = vmatprep.subr.bf16.mxu0 %v2537_v11  ;;  %v2562_v10 = vld [vmem:[#allocation10 + $0x268] ss:$16 sps:$4 sm:$0xff]   ;;  %v2567_v11 = vld [vmem:[#allocation10 + $0x284] ss:$16 sps:$4 sm:$0xff]  }
  0xee   :  { %1633 = vmatprep.subr.bf16.mxu1 %v2540_v12  ;;  %v2570_v12 = vld [vmem:[#allocation10 + $0x28c] ss:$16 sps:$4 sm:$0xff]  }
  0xf0   :  { %1552 = vmatpush1.bf16.msra.mxu0 %v2535_v13  ;;  %v2565_v13 = vld [vmem:[#allocation10 + $0x280] ss:$16 sps:$4 sm:$0xff]  }
  0xf1   :  { %1634 = vmatpush1.bf16.msra.mxu1 %v2538_v14  ;;  %1562 = vmatprep.subr.bf16.mxu0 %v2543_v15  ;;  %v2568_v14 = vld [vmem:[#allocation10 + $0x288] ss:$16 sps:$4 sm:$0xff]   ;;  %v2573_v15 = vld [vmem:[#allocation10 + $0x2a4] ss:$16 sps:$4 sm:$0xff]  }
  0xf2   :  { %1644 = vmatprep.subr.bf16.mxu1 %v2546_v16  ;;  %v2576_v16 = vld [vmem:[#allocation10 + $0x2ac] ss:$16 sps:$4 sm:$0xff]  }
 0x146   :  { %v243_v17 = vpop.f32.mrb[0].mxu0 }
 0x147   :  { %v284_v18 = vpop.f32.mrb[0].mxu1  ;;  %v245_v19 = vpop.f32.mrb[1].mxu0 }
 0x148   :  { %v286_v20 = vpop.f32.mrb[1].mxu1  ;;  %v247_v21 = vpop.f32.mrb[2].mxu0 }
 0x149   :  { %v288_v22 = vpop.f32.mrb[2].mxu1  ;;  %v248_v23 = vpop.f32.mrb[3].mxu0  ;;  %v2577_v21 = vld [vmem:[#allocation10 + $0x2c0] ss:$16 sps:$4 sm:$0xff]  }
 0x14a   :  { %v289_v24 = vpop.f32.mrb[3].mxu1  ;;  %v2580_v22 = vld [vmem:[#allocation10 + $0x2c8] ss:$16 sps:$4 sm:$0xff]   ;;  %v2585_v23 = vld [vmem:[#allocation10 + $0x2e4] ss:$16 sps:$4 sm:$0xff]  }
 0x14b   :  { %v2588_v24 = vld [vmem:[#allocation10 + $0x2ec] ss:$16 sps:$4 sm:$0xff]  }
 0x186   :  { %v645_v34 = vpop.f32.mrb[4].mxu0 }
 0x187   :  { %v686_v35 = vpop.f32.mrb[4].mxu1  ;;  %v646_v38 = vadd.f32 %v645_v34, %v243_v17  ;;  %v647_v40 = vpop.f32.mrb[5].mxu0  ;;  %v2571_v17 = vld [vmem:[#allocation10 + $0x2a0] ss:$16 sps:$4 sm:$0xff]  }
 0x188   :  { %v687_v39 = vadd.f32 %v686_v35, %v284_v18  ;;  %v688_v41 = vpop.f32.mrb[5].mxu1  ;;  %v648_v42 = vadd.f32 %v647_v40, %v245_v19  ;;  %v649_v44 = vpop.f32.mrb[6].mxu0  ;;  %v2574_v18 = vld [vmem:[#allocation10 + $0x2a8] ss:$16 sps:$4 sm:$0xff]   ;;  %v2579_v19 = vld [vmem:[#allocation10 + $0x2c4] ss:$16 sps:$4 sm:$0xff]  }
 0x189   :  { %v689_v43 = vadd.f32 %v688_v41, %v286_v20  ;;  %v690_v45 = vpop.f32.mrb[6].mxu1  ;;  %v715_v46 = vadd.f32 %v698_v32, %v646_v38  ;;  %v650_v48 = vpop.f32.mrb[7].mxu0  ;;  %v2582_v20 = vld [vmem:[#allocation10 + $0x2cc] ss:$16 sps:$4 sm:$0xff]   ;;  %v2591_v32 = vld [vmem:[#allocation10 + $0x304] ss:$16 sps:$4 sm:$0xff]  }
 0x18a   :  { %v2973_v47 = vadd.f32 %v706_v33, %v687_v39  ;;  %v691_v49 = vpop.f32.mrb[7].mxu1  ;;  %v716_v50 = vadd.f32 %v702_v36, %v648_v42  ;;  %v2594_v33 = vld [vmem:[#allocation10 + $0x30c] ss:$16 sps:$4 sm:$0xff]   ;;  %v2589_v34 = vld [vmem:[#allocation10 + $0x300] ss:$16 sps:$4 sm:$0xff]  }
 0x18b   :  { %v718_v51 = vadd.f32 %v710_v37, %v689_v43  ;;  %v719_v52 = vmul.f32 0.2, %v715_v46  ;;  %v2592_v35 = vld [vmem:[#allocation10 + $0x308] ss:$16 sps:$4 sm:$0xff]   ;;  %v2597_v36 = vld [vmem:[#allocation10 + $0x324] ss:$16 sps:$4 sm:$0xff]  }
 0x18c   :  { %v720_v53 = vmul.f32 0.2, %v716_v50  ;;  %v2600_v37 = vld [vmem:[#allocation10 + $0x32c] ss:$16 sps:$4 sm:$0xff]   ;;  %v2595_v38 = vld [vmem:[#allocation10 + $0x320] ss:$16 sps:$4 sm:$0xff]  }
 0x18d   :  { %v722_v54 = vmul.f32 0.2, %v718_v51  ;;  %v723_v55 = vmax.f32 %v715_v46, %v719_v52  ;;  %v2598_v39 = vld [vmem:[#allocation10 + $0x328] ss:$16 sps:$4 sm:$0xff]   ;;  %v2603_v40 = vld [vmem:[#allocation10 + $0x344] ss:$16 sps:$4 sm:$0xff]  }
 0x18e   :  { %v724_v56 = vmax.f32 %v716_v50, %v720_v53  ;;  %v2606_v41 = vld [vmem:[#allocation10 + $0x34c] ss:$16 sps:$4 sm:$0xff]   ;;  %v2601_v42 = vld [vmem:[#allocation10 + $0x340] ss:$16 sps:$4 sm:$0xff]   ;;  %v2604_v43 = vld [vmem:[#allocation10 + $0x348] ss:$16 sps:$4 sm:$0xff]  }
 0x18f   :  { %v726_v57 = vmax.f32 %v718_v51, %v722_v54  ;;  %v727_v61 = vpack.c.bf16 %v723_v55, %v723_v55  ;;  %v2609_v44 = vld [vmem:[#allocation10 + $0x364] ss:$16 sps:$4 sm:$0xff]   ;;  %v2612_v45 = vld [vmem:[#allocation10 + $0x36c] ss:$16 sps:$4 sm:$0xff]   ;;  %v2607_v46 = vld [vmem:[#allocation10 + $0x360] ss:$16 sps:$4 sm:$0xff]  }
 0x190   :  { %v728_v58 = vpack.c.bf16 %v724_v56, %v724_v56  ;;  %v2610_v48 = vld [vmem:[#allocation10 + $0x368] ss:$16 sps:$4 sm:$0xff]   ;;  %v2615_v49 = vld [vmem:[#allocation10 + $0x384] ss:$16 sps:$4 sm:$0xff]   ;;  %v2618_v50 = vld [vmem:[#allocation10 + $0x38c] ss:$16 sps:$4 sm:$0xff]  }
 0x191   :  { %v730_v0 = vpack.c.bf16 %v726_v57, %v726_v57  ;;  %v2613_v51 = vld [vmem:[#allocation10 + $0x380] ss:$16 sps:$4 sm:$0xff]   ;;  %v2616_v52 = vld [vmem:[#allocation10 + $0x388] ss:$16 sps:$4 sm:$0xff]   ;;  %v2621_v53 = vld [vmem:[#allocation10 + $0x3a4] ss:$16 sps:$4 sm:$0xff]  }
 0x192   :  { %1553 = vmatprep.mubr.bf16.mxu0 %v728_v58  ;;  %1635 = vmatprep.mubr.bf16.mxu1 %v728_v58  ;;  %v2624_v54 = vld [vmem:[#allocation10 + $0x3ac] ss:$16 sps:$4 sm:$0xff]   ;;  %v2619_v55 = vld [vmem:[#allocation10 + $0x3a0] ss:$16 sps:$4 sm:$0xff]   ;;  %v2622_v56 = vld [vmem:[#allocation10 + $0x3a8] ss:$16 sps:$4 sm:$0xff]  }
 0x193   :  { %1554 = vmatmul.mubr.bf16.vlgmr.msra.gmra.mrb[8].mxu0 %v727_v61  ;;  %1636 = vmatmul.mubr.bf16.vlgmr.msra.gmra.mrb[8].mxu1 %v727_v61  ;;  %v2627_v57 = vld [vmem:[#allocation10 + $0x3c4] ss:$16 sps:$4 sm:$0xff]   ;;  %v2630_v58 = vld [vmem:[#allocation10 + $0x3cc] ss:$16 sps:$4 sm:$0xff]   ;;  %v721_v61 = vmul.f32 0.2, %v2973_v47 }
 0x194   :  { %1563 = vmatpush1.bf16.msra.mxu0 %v2541_v59  ;;  %1645 = vmatpush1.bf16.msra.mxu1 %v2544_v60  ;;  %v2625_v59 = vld [vmem:[#allocation10 + $0x3c0] ss:$16 sps:$4 sm:$0xff]   ;;  %v2628_v60 = vld [vmem:[#allocation10 + $0x3c8] ss:$16 sps:$4 sm:$0xff]  }
 0x195   :  { %1594 = vmatprep.mubr.bf16.mxu0 %v730_v0  ;;  %1676 = vmatprep.mubr.bf16.mxu1 %v730_v0  ;;  %v2631_v0 = vld [vmem:[#allocation10 + $0x3e0] ss:$16 sps:$4 sm:$0xff]  }
 0x196   :  { %1564 = vmatprep.subr.bf16.mxu0 %v2549_v62  ;;  %1646 = vmatprep.subr.bf16.mxu1 %v2552_v63  ;;  %v2633_v62 = vld [vmem:[#allocation10 + $0x3e4] ss:$16 sps:$4 sm:$0xff]   ;;  %v2636_v63 = vld [vmem:[#allocation10 + $0x3ec] ss:$16 sps:$4 sm:$0xff]  }
 0x198   :  { %1565 = vmatpush1.bf16.msra.mxu0 %v2547_v1  ;;  %1647 = vmatpush1.bf16.msra.mxu1 %v2550_v2  ;;  %v2634_v1 = vld [vmem:[#allocation10 + $0x3e8] ss:$16 sps:$4 sm:$0xff]   ;;  %v725_v2 = vmax.f32 %v2973_v47, %v721_v61  ;;  %v2645_v47 = vld [vmem:[#allocation11 + $0x50] sm:$0xff]  }
 0x199   :  { %1566 = vmatprep.subr.bf16.mxu0 %v2555_v3  ;;  %1648 = vmatprep.subr.bf16.mxu1 %v2558_v4  ;;  %v2637_v3 = vld [vmem:[#allocation11 + $0x40] sm:$0xff]  }
 0x19a   :  { %v2638_v4 = vld [vmem:[#allocation11 + $0xc0] sm:$0xff]  }
 0x19c   :  { %1567 = vmatpush1.bf16.msra.mxu0 %v2553_v5  ;;  %1649 = vmatpush1.bf16.msra.mxu1 %v2556_v6  ;;  %v2639_v5 = vld [vmem:[#allocation11] sm:$0xff]  }
 0x19d   :  { %1568 = vmatprep.subr.bf16.mxu0 %v2561_v7  ;;  %1650 = vmatprep.subr.bf16.mxu1 %v2564_v8  ;;  %v2640_v6 = vld [vmem:[#allocation11 + $0x80] sm:$0xff]   ;;  %v729_v7 = vpack.c.bf16 %v725_v2, %v725_v2  ;;  %v2641_v8 = vld [vmem:[#allocation11 + $0x48] sm:$0xff]  }
 0x1a0   :  { %1569 = vmatpush1.bf16.msra.mxu0 %v2559_v9  ;;  %1651 = vmatpush1.bf16.msra.mxu1 %v2562_v10  ;;  %v2642_v9 = vld [vmem:[#allocation11 + $0xc8] sm:$0xff]  }
 0x1a1   :  { %1570 = vmatprep.subr.bf16.mxu0 %v2567_v11  ;;  %1652 = vmatprep.subr.bf16.mxu1 %v2570_v12  ;;  %v2643_v10 = vld [vmem:[#allocation11 + $0x8] sm:$0xff]   ;;  %v2646_v12 = vld [vmem:[#allocation11 + $0xd0] sm:$0xff]  }
 0x1a2   :  { %v2644_v11 = vld [vmem:[#allocation11 + $0x88] sm:$0xff]  }
 0x1a4   :  { %1571 = vmatpush1.bf16.msra.mxu0 %v2565_v13  ;;  %1653 = vmatpush1.bf16.msra.mxu1 %v2568_v14  ;;  %v2647_v13 = vld [vmem:[#allocation11 + $0x10] sm:$0xff]  }
 0x1a5   :  { %1572 = vmatprep.subr.bf16.mxu0 %v2573_v15  ;;  %1654 = vmatprep.subr.bf16.mxu1 %v2576_v16  ;;  %v2648_v14 = vld [vmem:[#allocation11 + $0x90] sm:$0xff]   ;;  %v2649_v15 = vld [vmem:[#allocation11 + $0x58] sm:$0xff]  }
 0x1a6   :  { %v2650_v16 = vld [vmem:[#allocation11 + $0xd8] sm:$0xff]  }
 0x1a8   :  { %1573 = vmatpush1.bf16.msra.mxu0 %v2571_v17  ;;  %1655 = vmatpush1.bf16.msra.mxu1 %v2574_v18  ;;  %v2651_v17 = vld [vmem:[#allocation11 + $0x18] sm:$0xff]  }
 0x1a9   :  { %1574 = vmatprep.subr.bf16.mxu0 %v2579_v19  ;;  %1656 = vmatprep.subr.bf16.mxu1 %v2582_v20  ;;  %v2652_v18 = vld [vmem:[#allocation11 + $0x98] sm:$0xff]   ;;  %v2653_v19 = vld [vmem:[#allocation11 + $0x60] sm:$0xff]  }
 0x1aa   :  { %v2654_v20 = vld [vmem:[#allocation11 + $0xe0] sm:$0xff]  }
 0x1ac   :  { %1575 = vmatpush1.bf16.msra.mxu0 %v2577_v21  ;;  %1657 = vmatpush1.bf16.msra.mxu1 %v2580_v22  ;;  %v2655_v21 = vld [vmem:[#allocation11 + $0x20] sm:$0xff]  }
 0x1ad   :  { %1576 = vmatprep.subr.bf16.mxu0 %v2585_v23  ;;  %1658 = vmatprep.subr.bf16.mxu1 %v2588_v24  ;;  %v2656_v22 = vld [vmem:[#allocation11 + $0xa0] sm:$0xff]   ;;  %v2657_v23 = vld [vmem:[#allocation11 + $0x68] sm:$0xff]  }
 0x1ae   :  { %v2658_v24 = vld [vmem:[#allocation11 + $0xe8] sm:$0xff]  }
 0x1b0   :  { %1577 = vmatpush1.bf16.msra.mxu0 %v2583_v25  ;;  %1659 = vmatpush1.bf16.msra.mxu1 %v2586_v29  ;;  %v2659_v25 = vld [vmem:[#allocation11 + $0x28] sm:$0xff]  }
 0x1b1   :  { %1578 = vmatprep.subr.bf16.mxu0 %v2591_v32  ;;  %1660 = vmatprep.subr.bf16.mxu1 %v2594_v33  ;;  %v2660_v29 = vld [vmem:[#allocation11 + $0xa8] sm:$0xff]   ;;  %v2661_v32 = vld [vmem:[#allocation11 + $0x70] sm:$0xff]  }
 0x1b2   :  { %v2662_v33 = vld [vmem:[#allocation11 + $0xf0] sm:$0xff]  }
 0x1b4   :  { %1579 = vmatpush1.bf16.msra.mxu0 %v2589_v34  ;;  %1661 = vmatpush1.bf16.msra.mxu1 %v2592_v35  ;;  %v2663_v34 = vld [vmem:[#allocation11 + $0x30] sm:$0xff]  }
 0x1b5   :  { %1580 = vmatprep.subr.bf16.mxu0 %v2597_v36  ;;  %1662 = vmatprep.subr.bf16.mxu1 %v2600_v37  ;;  %v2664_v35 = vld [vmem:[#allocation11 + $0xb0] sm:$0xff]   ;;  %v2665_v36 = vld [vmem:[#allocation11 + $0x78] sm:$0xff]  }
 0x1b6   :  { %v2666_v37 = vld [vmem:[#allocation11 + $0xf8] sm:$0xff]  }
 0x1b8   :  { %1581 = vmatpush1.bf16.msra.mxu0 %v2595_v38  ;;  %1663 = vmatpush1.bf16.msra.mxu1 %v2598_v39  ;;  %v2667_v38 = vld [vmem:[#allocation11 + $0x38] sm:$0xff]  }
 0x1b9   :  { %1582 = vmatprep.subr.bf16.mxu0 %v2603_v40  ;;  %1664 = vmatprep.subr.bf16.mxu1 %v2606_v41  ;;  %v2668_v39 = vld [vmem:[#allocation11 + $0xb8] sm:$0xff]  }
 0x1ba   :  { %v859_v40 = vld [vmem:[%s3000_s6] sm:$0xf] }
 0x1bb   :  { %v864_v41 = vrot.slane %v859_v40, %v697_v27 }
 0x1bc   :  { %1583 = vmatpush1.bf16.msra.mxu0 %v2601_v42  ;;  %1665 = vmatpush1.bf16.msra.mxu1 %v2604_v43  ;;  %v872_v42 = vrot.slane %v859_v40, %v705_v28  ;;  %v868_v43 = vrot.slane %v859_v40, %v701_v30 }
 0x1bd   :  { %1584 = vmatprep.subr.bf16.mxu0 %v2609_v44  ;;  %1666 = vmatprep.subr.bf16.mxu1 %v2612_v45  ;;  %v876_v44 = vrot.slane %v859_v40, %v709_v31 }
 0x1c0   :  { %1585 = vmatpush1.bf16.msra.mxu0 %v2607_v46  ;;  %1667 = vmatpush1.bf16.msra.mxu1 %v2610_v48 }
 0x1c1   :  { %1586 = vmatprep.subr.bf16.mxu0 %v2615_v49  ;;  %1668 = vmatprep.subr.bf16.mxu1 %v2618_v50 }
 0x1c4   :  { %1587 = vmatpush1.bf16.msra.mxu0 %v2613_v51  ;;  %1669 = vmatpush1.bf16.msra.mxu1 %v2616_v52 }
 0x1c5   :  { %1588 = vmatprep.subr.bf16.mxu0 %v2621_v53  ;;  %1670 = vmatprep.subr.bf16.mxu1 %v2624_v54 }
 0x1c8   :  { %1589 = vmatpush1.bf16.msra.mxu0 %v2619_v55  ;;  %1671 = vmatpush1.bf16.msra.mxu1 %v2622_v56 }
 0x1c9   :  { %1590 = vmatprep.subr.bf16.mxu0 %v2627_v57  ;;  %1672 = vmatprep.subr.bf16.mxu1 %v2630_v58 }
 0x1cc   :  { %1591 = vmatpush1.bf16.msra.mxu0 %v2625_v59  ;;  %1673 = vmatpush1.bf16.msra.mxu1 %v2628_v60 }
 0x1cd   :  { %1592 = vmatprep.subr.bf16.mxu0 %v2633_v62  ;;  %1674 = vmatprep.subr.bf16.mxu1 %v2636_v63 }
 0x1d0   :  { %1593 = vmatpush1.bf16.msra.mxu0 %v2631_v0  ;;  %1675 = vmatpush1.bf16.msra.mxu1 %v2634_v1 }
 0x1d1   :  { %2278 = vmatprep.subr.bf16.mxu0 %v2637_v3  ;;  %2300 = vmatprep.subr.bf16.mxu1 %v2638_v4 }
 0x1d3   :  { %1595 = vmatmul.mubr.bf16.vlgmr.msra.gmra.mrb[8].mxu0 %v729_v7  ;;  %1677 = vmatmul.mubr.bf16.vlgmr.msra.gmra.mrb[8].mxu1 %v729_v7 }
 0x1d4   :  { %2279 = vmatpush3.bf16.msra.mxu0 %v2639_v5  ;;  %2301 = vmatpush3.bf16.msra.mxu1 %v2640_v6 }
 0x1d5   :  { %2280 = vmatprep.subr.bf16.mxu0 %v2641_v8  ;;  %2302 = vmatprep.subr.bf16.mxu1 %v2642_v9  ;;  %v2034_v9 = vstv %s3002_s8 }
 0x1d8   :  { %2281 = vmatpush3.bf16.msra.mxu0 %v2643_v10  ;;  %2303 = vmatpush3.bf16.msra.mxu1 %v2644_v11 }
 0x1d9   :  { %2282 = vmatprep.subr.bf16.mxu0 %v2645_v47  ;;  %2304 = vmatprep.subr.bf16.mxu1 %v2646_v12 }
 0x1dc   :  { %2283 = vmatpush3.bf16.msra.mxu0 %v2647_v13  ;;  %2305 = vmatpush3.bf16.msra.mxu1 %v2648_v14 }
 0x1dd   :  { %2284 = vmatprep.subr.bf16.mxu0 %v2649_v15  ;;  %2306 = vmatprep.subr.bf16.mxu1 %v2650_v16 }
 0x1e0   :  { %2285 = vmatpush3.bf16.msra.mxu0 %v2651_v17  ;;  %2307 = vmatpush3.bf16.msra.mxu1 %v2652_v18 }
 0x1e1   :  { %2286 = vmatprep.subr.bf16.mxu0 %v2653_v19  ;;  %2308 = vmatprep.subr.bf16.mxu1 %v2654_v20 }
 0x1e4   :  { %2287 = vmatpush3.bf16.msra.mxu0 %v2655_v21  ;;  %2309 = vmatpush3.bf16.msra.mxu1 %v2656_v22 }
 0x1e5   :  { %2288 = vmatprep.subr.bf16.mxu0 %v2657_v23  ;;  %2310 = vmatprep.subr.bf16.mxu1 %v2658_v24 }
 0x1e8   :  { %2289 = vmatpush3.bf16.msra.mxu0 %v2659_v25  ;;  %2311 = vmatpush3.bf16.msra.mxu1 %v2660_v29 }
 0x1e9   :  { %2290 = vmatprep.subr.bf16.mxu0 %v2661_v32  ;;  %2312 = vmatprep.subr.bf16.mxu1 %v2662_v33 }
 0x1ec   :  { %2291 = vmatpush3.bf16.msra.mxu0 %v2663_v34  ;;  %2313 = vmatpush3.bf16.msra.mxu1 %v2664_v35 }
 0x1ed   :  { %2292 = vmatprep.subr.bf16.mxu0 %v2665_v36  ;;  %2314 = vmatprep.subr.bf16.mxu1 %v2666_v37 }
 0x1f0   :  { %2293 = vmatpush3.bf16.msra.mxu0 %v2667_v38  ;;  %2315 = vmatpush3.bf16.msra.mxu1 %v2668_v39 }
 0x2a6   :  { %v1596_v45 = vpop.f32.mrb[8].mxu0  ;;  %v1678_v46 = vpop.f32.mrb[8].mxu1 }
 0x2a7   :  { %v2322_v48 = vadd.f32 %v1596_v45, %v864_v41  ;;  %v2324_v49 = vadd.f32 %v1678_v46, %v872_v42  ;;  %v1598_v50 = vpop.f32.mrb[9].mxu0  ;;  %v1680_v51 = vpop.f32.mrb[9].mxu1 }
 0x2a8   :  { %v2323_v52 = vadd.f32 %v1598_v50, %v868_v43  ;;  %v2325_v53 = vadd.f32 %v1680_v51, %v876_v44  ;;  %v1600_v54 = vpop.f32.mrb[10].mxu0  ;;  %v1682_v55 = vpop.f32.mrb[10].mxu1 }
 0x2a9   :  { %v1685_v27 = vmul.f32 0.2, %v2322_v48  ;;  %v1687_v56 = vmul.f32 0.2, %v2324_v49  ;;  %v1601_v57 = vpop.f32.mrb[11].mxu0  ;;  %v1683_v28 = vpop.f32.mrb[11].mxu1 }
 0x2aa   :  { %v1686_v58 = vmul.f32 0.2, %v2323_v52  ;;  %v1688_v59 = vmul.f32 0.2, %v2325_v53 }
 0x2ab   :  { %v1689_v30 = vmax.f32 %v2322_v48, %v1685_v27  ;;  %v1691_v60 = vmax.f32 %v2324_v49, %v1687_v56 }
 0x2ac   :  { %v1690_v26 = vmax.f32 %v2323_v52, %v1686_v58  ;;  %v1692_v31 = vmax.f32 %v2325_v53, %v1688_v59 }
 0x2ad   :  { %v1693_v63 = vpack.c.bf16 %v1689_v30, %v1689_v30  ;;  %v1695_v0 = vpack.c.bf16 %v1691_v60, %v1691_v60 }
 0x2ae   :  { %v1694_v61 = vpack.c.bf16 %v1690_v26, %v1690_v26  ;;  %v1696_v62 = vpack.c.bf16 %v1692_v31, %v1692_v31 }
 0x2b0   :  { %1985 = vmatprep.mubr.bf16.mxu0 %v1694_v61  ;;  %2025 = vmatprep.mubr.bf16.mxu1 %v1696_v62 }
 0x2b1   :  { %1986 = vmatmul.mubr.bf16.vlgmr.msra.gmra.mrb[12].mxu0 %v1693_v63  ;;  %2026 = vmatmul.mubr.bf16.vlgmr.msra.gmra.mrb[12].mxu1 %v1695_v0 }
 0x384   :  { %v2294_v1 = vpop.f32.mrb[12].mxu0  ;;  %v2316_v2 = vpop.f32.mrb[12].mxu1 }
 0x385   :  { %v2295_v3 = vpop.f32.mrb[13].mxu0  ;;  %v2317_v4 = vpop.f32.mrb[13].mxu1 }
 0x386   :  { %v2296_v5 = vadd.f32 %v2295_v3, %v2294_v1  ;;  %v2318_v6 = vadd.f32 %v2317_v4, %v2316_v2  ;;  %v2297_v7 = vpop.f32.mrb[14].mxu0  ;;  %v2319_v8 = vpop.f32.mrb[14].mxu1 }
 0x387   :  { %v2298_v10 = vpop.f32.mrb[15].mxu0  ;;  %v2320_v11 = vpop.f32.mrb[15].mxu1 }
 0x388   :  { %v2028_v47 = vadd.f32 %v2318_v6, %v2296_v5 }
 0x38a   :  { %v2035_v12 = vadd.f32 %v2034_v9, %v2028_v47 }
 0x38c   :  { %2037 = vst.msk [vmem:[%s3003_s9] sm:$0xff] %vm2036_vm2, %v2035_v12 }
 0x38d   :  { %2042 = vsyncpa [#allocation4], 1 }
 0x38e   :  { %2043 = vsyncpa [#allocation6], 1 }
 0x38f   :  { %2044 = vsyncpa [#allocation9], 1 }
 0x390   :  { %2045 = vsyncpa [#allocation12], 1 }

// kernel: tpu_custom_call.1
= control target key start
LH: loop header
LB: loop body
LE: loop exit
PB: predicated region body
PF: predicated region fallthrough
CT: control target
= control target key end

     0   :  { %15 = vsyncpa [#allocation4], 0  ;;  %s2994_s0 = inlined_call_operand.hbm [shape: f32[8,256], index: 0, kind: input, shape index: {}]   ;;  %s2995_s1 = inlined_call_operand.hbm [shape: f32[8,8], index: 1, kind: input, shape index: {}]   ;;  %s2996_s2 = inlined_call_operand.hbm [shape: bf16[256,512], index: 2, kind: input, shape index: {}]   ;;  %s2997_s3 = inlined_call_operand.hbm [shape: bf16[8,512], index: 3, kind: input, shape index: {}]   ;;  %s2998_s4 = inlined_call_operand.vmem [shape: f32[1,512], index: 4, kind: input, shape index: {}]   ;;  %s2999_s5 = inlined_call_operand.hbm [shape: bf16[512,512], index: 5, kind: input, shape index: {}]   ;;  %s3000_s6 = inlined_call_operand.vmem [shape: f32[1,512], index: 6, kind: input, shape index: {}]   ;;  %s3001_s7 = inlined_call_operand.hbm [shape: bf16[512,128], index: 7, kind: input, shape index: {}]   ;;  %s3002_s8 = inlined_call_operand.<no memory space> [shape: f32[1,1], index: 8, kind: input, shape index: {}]   ;;  %s3003_s9 = inlined_call_operand.vmem [shape: f32[8,1], index: 9, kind: output, shape index: {}]  }
   0x1   :  { %16 = vsyncpa [#allocation6], 0 }
   0x2   :  { %17 = vsyncpa [#allocation9], 0 }
   0x3   :  { %18 = vsyncpa [#allocation12], 0  ;;  %s2809_s30 = smov [#allocation5]   ;;  %s2810_s11 = smov [#allocation8]  }
   0x4   :  { %s35_s10 = sshll.u32 %s2809_s30, 4  ;;  %s57_s12 = sshll.u32 %s2810_s11, 4  ;;  %s36_s10 = int_to_ptr.vmem [resolvable:$true] %s35_s10  ;;  %s58_s12 = int_to_ptr.vmem [resolvable:$true] %s57_s12 }
   0x5   :  { %s2669_s15 = scalar_lea.hbm %s2995_s1, 128 }
   0x6   :  { %p2670_p0 = scmp.ne.s32.totalorder %s2995_s1, %s2669_s15  ;;  %p2673_p1 = scmp.lt.u32.totalorder %s2669_s15, %s2995_s1 }
   0x8   :  { %p2675_p2 = pnand %p2673_p1, %p2670_p0 }
   0xa   :  { %2678 = shalt.err (!%p2675_p2)
}
   0xb   :  { %s2679_s20 = scalar_lea.vmem %s36_s10, 128  ;;  %p2684_p4 = scmp.lt.s32.totalorder %s36_s10, %s36_s10 }
   0xc   :  { %p2680_p3 = scmp.ne.s32.totalorder %s36_s10, %s2679_s20  ;;  %p2685_p5 = scmp.lt.s32.totalorder %s2679_s20, %s2679_s20 }
   0xe   :  { %p2686_p6 = por %p2685_p5, %p2684_p4 }
  0x10   :  { %p2687_p7 = pnand %p2686_p6, %p2680_p3 }
  0x12   :  { %2690 = shalt.err (!%p2687_p7)
}
  0x13   :  { %38 = dma.hbm_to_vmem [thread:$0]  %s2995_s1, 128, %s36_s10, [#allocation6]  }
  0x14   :  { %s2691_s25 = scalar_lea.hbm %s2997_s3, 256 }
  0x15   :  { %p2692_p8 = scmp.ne.s32.totalorder %s2997_s3, %s2691_s25  ;;  %p2695_p9 = scmp.lt.u32.totalorder %s2691_s25, %s2997_s3 }
  0x17   :  { %p2697_p10 = pnand %p2695_p9, %p2692_p8 }
  0x19   :  { %2700 = shalt.err (!%p2697_p10)
}
  0x1a   :  { %s2701_s30 = scalar_lea.vmem %s58_s12, 256  ;;  %p2706_p12 = scmp.lt.s32.totalorder %s58_s12, %s58_s12 }
  0x1b   :  { %p2702_p11 = scmp.ne.s32.totalorder %s58_s12, %s2701_s30  ;;  %p2707_p13 = scmp.lt.s32.totalorder %s2701_s30, %s2701_s30 }
  0x1d   :  { %p2708_p0 = por %p2707_p13, %p2706_p12 }
  0x1f   :  { %p2709_p1 = pnand %p2708_p0, %p2702_p11 }
  0x21   :  { %2712 = shalt.err (!%p2709_p1)
}
  0x22   :  { %60 = dma.hbm_to_vmem [thread:$0]  %s2997_s3, 256, %s58_s12, [#allocation9]  }
  0x23   :  { %s2811_s11 = smov [#allocation3]   ;;  %s2812_s14 = smov [#allocation7]  }
  0x24   :  { %s25_s13 = sshll.u32 %s2811_s11, 4  ;;  %s44_s15 = sshll.u32 %s2812_s14, 4  ;;  %s26_s13 = int_to_ptr.vmem [resolvable:$true] %s25_s13  ;;  %s2894_s15 = int_to_ptr.vmem [resolvable:$true] %s44_s15 }
  0x25   :  { %s2713_s18 = scalar_lea.hbm %s2994_s0, 256 }
  0x26   :  { %p2714_p2 = scmp.ne.s32.totalorder %s2994_s0, %s2713_s18  ;;  %p2717_p3 = scmp.lt.u32.totalorder %s2713_s18, %s2994_s0 }
  0x28   :  { %p2719_p4 = pnand %p2717_p3, %p2714_p2 }
  0x2a   :  { %2722 = shalt.err (!%p2719_p4)
}
  0x2b   :  { %s2723_s3 = scalar_lea.vmem %s26_s13, 256  ;;  %p2728_p6 = scmp.lt.s32.totalorder %s26_s13, %s26_s13 }
  0x2c   :  { %p2724_p5 = scmp.ne.s32.totalorder %s26_s13, %s2723_s3  ;;  %p2729_p7 = scmp.lt.s32.totalorder %s2723_s3, %s2723_s3 }
  0x2e   :  { %p2730_p8 = por %p2729_p7, %p2728_p6 }
  0x30   :  { %p2731_p9 = pnand %p2730_p8, %p2724_p5 }
  0x32   :  { %2734 = shalt.err (!%p2731_p9)
}
  0x33   :  { %28 = dma.hbm_to_vmem [thread:$0]  %s2994_s0, 256, %s26_s13, [#allocation4]  }
  0x34   :  { %s2735_s26 = scalar_lea.hbm %s2996_s2, 8192 }
  0x35   :  { %p2736_p10 = scmp.ne.s32.totalorder %s2996_s2, %s2735_s26  ;;  %p2739_p11 = scmp.lt.u32.totalorder %s2735_s26, %s2996_s2 }
  0x37   :  { %p2741_p12 = pnand %p2739_p11, %p2736_p10 }
  0x39   :  { %2744 = shalt.err (!%p2741_p12)
}
  0x3a   :  { %s2745_s1 = scalar_lea.vmem %s2894_s15, 8192  ;;  %p2750_p0 = scmp.lt.s32.totalorder %s2894_s15, %s2894_s15 }
  0x3b   :  { %p2746_p13 = scmp.ne.s32.totalorder %s2894_s15, %s2745_s1  ;;  %p2751_p1 = scmp.lt.s32.totalorder %s2745_s1, %s2745_s1 }
  0x3d   :  { %p2752_p2 = por %p2751_p1, %p2750_p0 }
  0x3f   :  { %p2753_p3 = pnand %p2752_p2, %p2746_p13 }
  0x41   :  { %2756 = shalt.err (!%p2753_p3)
}
  0x42   :  { %s2813_s0 = smov 256   ;;  %s2814_s10 = smov 16  }
  0x43   :  { %50 = dma.hbm_to_vmem [thread:$0]  %s2996_s2, 8192, %s2894_s15, [#allocation6], %s2813_s0, %s2813_s0, %s2814_s10  }
  0x44   :  { %s2815_s14 = smov [#allocation10]   ;;  %s2816_s17 = smov [#allocation11]  }
  0x45   :  { %s68_s16 = sshll.u32 %s2815_s14, 4  ;;  %s82_s18 = sshll.u32 %s2816_s17, 4  ;;  %s69_s16 = int_to_ptr.vmem [resolvable:$true] %s68_s16  ;;  %s2925_s18 = int_to_ptr.vmem [resolvable:$true] %s82_s18 }
  0x46   :  { %s2757_s21 = scalar_lea.hbm %s2999_s5, 16384 }
  0x47   :  { %p2758_p4 = scmp.ne.s32.totalorder %s2999_s5, %s2757_s21  ;;  %p2761_p5 = scmp.lt.u32.totalorder %s2757_s21, %s2999_s5 }
  0x49   :  { %p2763_p6 = pnand %p2761_p5, %p2758_p4 }
  0x4b   :  { %2766 = shalt.err (!%p2763_p6)
}
  0x4c   :  { %s2767_s2 = scalar_lea.vmem %s69_s16, 16384  ;;  %p2772_p8 = scmp.lt.s32.totalorder %s69_s16, %s69_s16 }
  0x4d   :  { %p2768_p7 = scmp.ne.s32.totalorder %s69_s16, %s2767_s2  ;;  %p2773_p9 = scmp.lt.s32.totalorder %s2767_s2, %s2767_s2 }
  0x4f   :  { %p2774_p10 = por %p2773_p9, %p2772_p8 }
  0x51   :  { %p2775_p11 = pnand %p2774_p10, %p2768_p7 }
  0x53   :  { %2778 = shalt.err (!%p2775_p11)
}
  0x54   :  { %74 = dma.hbm_to_vmem [thread:$0]  %s2999_s5, 16384, %s69_s16, [#allocation9], %s2813_s0, %s2813_s0, %s2814_s10  }
  0x55   :  { %s2779_s27 = scalar_lea.hbm %s3001_s7, 4096 }
  0x56   :  { %p2780_p12 = scmp.ne.s32.totalorder %s3001_s7, %s2779_s27  ;;  %p2783_p13 = scmp.lt.u32.totalorder %s2779_s27, %s3001_s7 }
  0x58   :  { %p2785_p0 = pnand %p2783_p13, %p2780_p12 }
  0x5a   :  { %2788 = shalt.err (!%p2785_p0)
}
  0x5b   :  { %s2789_s11 = scalar_lea.vmem %s2925_s18, 4096  ;;  %p2794_p2 = scmp.lt.s32.totalorder %s2925_s18, %s2925_s18 }
  0x5c   :  { %p2790_p1 = scmp.ne.s32.totalorder %s2925_s18, %s2789_s11  ;;  %p2795_p3 = scmp.lt.s32.totalorder %s2789_s11, %s2789_s11 }
  0x5e   :  { %p2796_p4 = por %p2795_p3, %p2794_p2 }
  0x60   :  { %p2797_p5 = pnand %p2796_p4, %p2790_p1 }
  0x62   :  { %2800 = shalt.err (!%p2797_p5)
}
  0x63   :  { %s2817_s5 = smov 64   ;;  %s2818_s0 = smov 4  }
  0x64   :  { %88 = dma.hbm_to_vmem [thread:$0]  %s3001_s7, 4096, %s2925_s18, [#allocation12], %s2817_s5, %s2817_s5, %s2818_s0  }
  0x65   :  { %2801 = dma.done.wait [#allocation4], 256  }
  0x66   :  { %2802 = vsyncadd [#allocation4], 4294967040 }
  0x67   :  { %2803 = dma.done.wait [#allocation6], 8320  }
  0x68   :  { %2804 = vsyncadd [#allocation6], 4294958976 }
  0x69   :  { %2805 = dma.done.wait [#allocation9], 16640  }
  0x6a   :  { %2806 = vsyncadd [#allocation9], 4294950656 }
  0x6b   :  { %2807 = dma.done.wait [#allocation12], 4096  }
  0x6c   :  { %2808 = vsyncadd [#allocation12], 4294963200  ;;  %v2819_v0 = vmov 0   ;;  %v180_v1 = vld [vmem:[#allocation8] sm:$0xff]  ;;  %vm196_vm0 = vcmask 1043456   ;;  %v181_v2 = vld [vmem:[#allocation8 + $0x8] sm:$0xff] }
  0x6d   :  { %241 = vmatprep.mubr.bf16.mxu0 %v2819_v0  ;;  %282 = vmatprep.mubr.bf16.mxu1 %v2819_v0  ;;  %v114_v3 = vld [vmem:[#allocation5] sm:$0xff]  ;;  %v2047_v4 = vcombine.high %v180_v1, %v180_v1  ;;  %v2049_v5 = vcombine.high %v181_v2, %v181_v2  ;;  %v2046_v6 = vcombine.low %v180_v1, %v180_v1  ;;  %v2351_v8 = vld [vmem:[#allocation7 + $0x4] ss:$16 sps:$4 sm:$0xff]   ;;  %v2349_v12 = vld [vmem:[#allocation7] ss:$16 sps:$4 sm:$0xff]   ;;  %vm192_vm1 = vcmask 64512  }
  0x6e   :  { %v2048_v7 = vcombine.low %v181_v2, %v181_v2  ;;  %v115_v11 = vpack.c.bf16 %v114_v3, %v114_v3  ;;  %v2354_v13 = vld [vmem:[#allocation7 + $0xc] ss:$16 sps:$4 sm:$0xff]   ;;  %v2352_v14 = vld [vmem:[#allocation7 + $0x8] ss:$16 sps:$4 sm:$0xff]   ;;  %v2357_v15 = vld [vmem:[#allocation7 + $0x24] ss:$16 sps:$4 sm:$0xff]  }
  0x6f   :  { %2050 = vmatprep.subr.msk.bf16.mxu0 %vm196_vm0, %v2047_v4  ;;  %2052 = vmatprep.subr.msk.bf16.mxu1 %vm196_vm0, %v2049_v5  ;;  %v198_v9 = vsel %vm196_vm0, %v2046_v6, 0  ;;  %v2360_v16 = vld [vmem:[#allocation7 + $0x2c] ss:$16 sps:$4 sm:$0xff]   ;;  %v2355_v17 = vld [vmem:[#allocation7 + $0x20] ss:$16 sps:$4 sm:$0xff]   ;;  %vm2036_vm2 = vcmask 7168  }
  0x70   :  { %v204_v10 = vsel %vm196_vm0, %v2048_v7, 0  ;;  %210 = vmatpush1.bf16.msra.mxu0 %v198_v9  ;;  %v2358_v18 = vld [vmem:[#allocation7 + $0x28] ss:$16 sps:$4 sm:$0xff]   ;;  %v2363_v19 = vld [vmem:[#allocation7 + $0x44] ss:$16 sps:$4 sm:$0xff]  }
  0x71   :  { %251 = vmatpush1.bf16.msra.mxu1 %v204_v10  ;;  %611 = vmatprep.subr.bf16.mxu0 %v2351_v8  ;;  %v2366_v20 = vld [vmem:[#allocation7 + $0x4c] ss:$16 sps:$4 sm:$0xff]   ;;  %v2361_v21 = vld [vmem:[#allocation7 + $0x40] ss:$16 sps:$4 sm:$0xff]   ;;  %v2364_v22 = vld [vmem:[#allocation7 + $0x48] ss:$16 sps:$4 sm:$0xff]  }
  0x72   :  { %652 = vmatprep.subr.bf16.mxu1 %v2354_v13  ;;  %v2369_v23 = vld [vmem:[#allocation7 + $0x64] ss:$16 sps:$4 sm:$0xff]   ;;  %v2372_v24 = vld [vmem:[#allocation7 + $0x6c] ss:$16 sps:$4 sm:$0xff]   ;;  %v2367_v25 = vld [vmem:[#allocation7 + $0x60] ss:$16 sps:$4 sm:$0xff]  }
  0x73   :  { %2051 = vmatmul.mubr.msk.bf16.vlgmr.msra.gmra.mrb[0].mxu0 %vm192_vm1, %v115_v11  ;;  %v2370_v26 = vld [vmem:[#allocation7 + $0x68] ss:$16 sps:$4 sm:$0xff]   ;;  %v2375_v27 = vld [vmem:[#allocation7 + $0x84] ss:$16 sps:$4 sm:$0xff]   ;;  %v2378_v28 = vld [vmem:[#allocation7 + $0x8c] ss:$16 sps:$4 sm:$0xff]  }
  0x74   :  { %2053 = vmatmul.mubr.msk.bf16.vlgmr.msra.gmra.mrb[0].mxu1 %vm192_vm1, %v115_v11  ;;  %612 = vmatpush1.bf16.msra.mxu0 %v2349_v12  ;;  %v2373_v29 = vld [vmem:[#allocation7 + $0x80] ss:$16 sps:$4 sm:$0xff]   ;;  %v2376_v30 = vld [vmem:[#allocation7 + $0x88] ss:$16 sps:$4 sm:$0xff]   ;;  %v2381_v31 = vld [vmem:[#allocation7 + $0xa4] ss:$16 sps:$4 sm:$0xff]  }
  0x75   :  { %653 = vmatpush1.bf16.msra.mxu1 %v2352_v14  ;;  %613 = vmatprep.subr.bf16.mxu0 %v2357_v15  ;;  %v2384_v32 = vld [vmem:[#allocation7 + $0xac] ss:$16 sps:$4 sm:$0xff]   ;;  %v2379_v33 = vld [vmem:[#allocation7 + $0xa0] ss:$16 sps:$4 sm:$0xff]   ;;  %v2382_v34 = vld [vmem:[#allocation7 + $0xa8] ss:$16 sps:$4 sm:$0xff]  }
  0x76   :  { %654 = vmatprep.subr.bf16.mxu1 %v2360_v16  ;;  %v2387_v35 = vld [vmem:[#allocation7 + $0xc4] ss:$16 sps:$4 sm:$0xff]   ;;  %v2390_v36 = vld [vmem:[#allocation7 + $0xcc] ss:$16 sps:$4 sm:$0xff]   ;;  %v2385_v37 = vld [vmem:[#allocation7 + $0xc0] ss:$16 sps:$4 sm:$0xff]  }
  0x77   :  { %v2388_v38 = vld [vmem:[#allocation7 + $0xc8] ss:$16 sps:$4 sm:$0xff]   ;;  %v2393_v39 = vld [vmem:[#allocation7 + $0xe4] ss:$16 sps:$4 sm:$0xff]   ;;  %v2396_v40 = vld [vmem:[#allocation7 + $0xec] ss:$16 sps:$4 sm:$0xff]  }
  0x78   :  { %614 = vmatpush1.bf16.msra.mxu0 %v2355_v17  ;;  %v2391_v41 = vld [vmem:[#allocation7 + $0xe0] ss:$16 sps:$4 sm:$0xff]   ;;  %v2394_v42 = vld [vmem:[#allocation7 + $0xe8] ss:$16 sps:$4 sm:$0xff]   ;;  %v2399_v43 = vld [vmem:[#allocation7 + $0x104] ss:$16 sps:$4 sm:$0xff]  }
  0x79   :  { %655 = vmatpush1.bf16.msra.mxu1 %v2358_v18  ;;  %615 = vmatprep.subr.bf16.mxu0 %v2363_v19  ;;  %v2402_v44 = vld [vmem:[#allocation7 + $0x10c] ss:$16 sps:$4 sm:$0xff]   ;;  %v2397_v45 = vld [vmem:[#allocation7 + $0x100] ss:$16 sps:$4 sm:$0xff]   ;;  %v2400_v46 = vld [vmem:[#allocation7 + $0x108] ss:$16 sps:$4 sm:$0xff]  }
  0x7a   :  { %656 = vmatprep.subr.bf16.mxu1 %v2366_v20  ;;  %v2405_v47 = vld [vmem:[#allocation7 + $0x124] ss:$16 sps:$4 sm:$0xff]   ;;  %v2408_v48 = vld [vmem:[#allocation7 + $0x12c] ss:$16 sps:$4 sm:$0xff]   ;;  %v2403_v49 = vld [vmem:[#allocation7 + $0x120] ss:$16 sps:$4 sm:$0xff]  }
  0x7b   :  { %v2406_v50 = vld [vmem:[#allocation7 + $0x128] ss:$16 sps:$4 sm:$0xff]   ;;  %v2411_v51 = vld [vmem:[#allocation7 + $0x144] ss:$16 sps:$4 sm:$0xff]   ;;  %v2414_v52 = vld [vmem:[#allocation7 + $0x14c] ss:$16 sps:$4 sm:$0xff]  }
  0x7c   :  { %616 = vmatpush1.bf16.msra.mxu0 %v2361_v21  ;;  %v2409_v53 = vld [vmem:[#allocation7 + $0x140] ss:$16 sps:$4 sm:$0xff]   ;;  %v2412_v54 = vld [vmem:[#allocation7 + $0x148] ss:$16 sps:$4 sm:$0xff]   ;;  %v2417_v55 = vld [vmem:[#allocation7 + $0x164] ss:$16 sps:$4 sm:$0xff]  }
  0x7d   :  { %657 = vmatpush1.bf16.msra.mxu1 %v2364_v22  ;;  %617 = vmatprep.subr.bf16.mxu0 %v2369_v23  ;;  %v2420_v56 = vld [vmem:[#allocation7 + $0x16c] ss:$16 sps:$4 sm:$0xff]   ;;  %v111_v57 = vld [vmem:[#allocation3 + $0x8] sm:$0xff]  ;;  %v2418_v60 = vld [vmem:[#allocation7 + $0x168] ss:$16 sps:$4 sm:$0xff]  }
  0x7e   :  { %658 = vmatprep.subr.bf16.mxu1 %v2372_v24  ;;  %v113_v58 = vpack.c.bf16 %v111_v57, %v111_v57  ;;  %v2415_v59 = vld [vmem:[#allocation7 + $0x160] ss:$16 sps:$4 sm:$0xff]   ;;  %v2423_v61 = vld [vmem:[#allocation7 + $0x184] ss:$16 sps:$4 sm:$0xff]   ;;  %v2426_v62 = vld [vmem:[#allocation7 + $0x18c] ss:$16 sps:$4 sm:$0xff]  }
  0x7f   :  { %v2421_v63 = vld [vmem:[#allocation7 + $0x180] ss:$16 sps:$4 sm:$0xff]   ;;  %v2424_v0 = vld [vmem:[#allocation7 + $0x188] ss:$16 sps:$4 sm:$0xff]   ;;  %v2429_v1 = vld [vmem:[#allocation7 + $0x1a4] ss:$16 sps:$4 sm:$0xff]  }
  0x80   :  { %618 = vmatpush1.bf16.msra.mxu0 %v2367_v25  ;;  %643 = vmatprep.mubr.bf16.mxu0 %v113_v58  ;;  %v2432_v2 = vld [vmem:[#allocation7 + $0x1ac] ss:$16 sps:$4 sm:$0xff]   ;;  %v2427_v3 = vld [vmem:[#allocation7 + $0x1a0] ss:$16 sps:$4 sm:$0xff]   ;;  %v2430_v4 = vld [vmem:[#allocation7 + $0x1a8] ss:$16 sps:$4 sm:$0xff]  }
  0x81   :  { %659 = vmatpush1.bf16.msra.mxu1 %v2370_v26  ;;  %619 = vmatprep.subr.bf16.mxu0 %v2375_v27  ;;  %v2435_v5 = vld [vmem:[#allocation7 + $0x1c4] ss:$16 sps:$4 sm:$0xff]   ;;  %v2438_v6 = vld [vmem:[#allocation7 + $0x1cc] ss:$16 sps:$4 sm:$0xff]   ;;  %v2433_v7 = vld [vmem:[#allocation7 + $0x1c0] ss:$16 sps:$4 sm:$0xff]  }
  0x82   :  { %660 = vmatprep.subr.bf16.mxu1 %v2378_v28  ;;  %684 = vmatprep.mubr.bf16.mxu1 %v113_v58  ;;  %v2436_v8 = vld [vmem:[#allocation7 + $0x1c8] ss:$16 sps:$4 sm:$0xff]   ;;  %v2441_v9 = vld [vmem:[#allocation7 + $0x1e4] ss:$16 sps:$4 sm:$0xff]   ;;  %v2444_v10 = vld [vmem:[#allocation7 + $0x1ec] ss:$16 sps:$4 sm:$0xff]  }
  0x83   :  { %v2439_v11 = vld [vmem:[#allocation7 + $0x1e0] ss:$16 sps:$4 sm:$0xff]   ;;  %v2442_v12 = vld [vmem:[#allocation7 + $0x1e8] ss:$16 sps:$4 sm:$0xff]   ;;  %v2447_v16 = vld [vmem:[#allocation10 + $0x4] ss:$16 sps:$4 sm:$0xff]  }
  0x84   :  { %620 = vmatpush1.bf16.msra.mxu0 %v2373_v29  ;;  %v110_v13 = vld [vmem:[#allocation3] sm:$0xff]  ;;  %v2445_v15 = vld [vmem:[#allocation10] ss:$16 sps:$4 sm:$0xff]   ;;  %v2453_v19 = vld [vmem:[#allocation10 + $0x24] ss:$16 sps:$4 sm:$0xff]  }
  0x85   :  { %661 = vmatpush1.bf16.msra.mxu1 %v2376_v30  ;;  %621 = vmatprep.subr.bf16.mxu0 %v2381_v31  ;;  %v112_v14 = vpack.c.bf16 %v110_v13, %v110_v13  ;;  %v2448_v17 = vld [vmem:[#allocation10 + $0x8] ss:$16 sps:$4 sm:$0xff]   ;;  %v2450_v18 = vld [vmem:[#allocation10 + $0xc] ss:$16 sps:$4 sm:$0xff]   ;;  %v2451_v21 = vld [vmem:[#allocation10 + $0x20] ss:$16 sps:$4 sm:$0xff]  }
  0x86   :  { %662 = vmatprep.subr.bf16.mxu1 %v2384_v32  ;;  %v2456_v20 = vld [vmem:[#allocation10 + $0x2c] ss:$16 sps:$4 sm:$0xff]   ;;  %v2454_v22 = vld [vmem:[#allocation10 + $0x28] ss:$16 sps:$4 sm:$0xff]   ;;  %v2459_v23 = vld [vmem:[#allocation10 + $0x44] ss:$16 sps:$4 sm:$0xff]  }
  0x87   :  { %v2462_v24 = vld [vmem:[#allocation10 + $0x4c] ss:$16 sps:$4 sm:$0xff]   ;;  %v2457_v25 = vld [vmem:[#allocation10 + $0x40] ss:$16 sps:$4 sm:$0xff]   ;;  %v2460_v26 = vld [vmem:[#allocation10 + $0x48] ss:$16 sps:$4 sm:$0xff]  }
  0x88   :  { %622 = vmatpush1.bf16.msra.mxu0 %v2379_v33  ;;  %v2465_v27 = vld [vmem:[#allocation10 + $0x64] ss:$16 sps:$4 sm:$0xff]   ;;  %v2468_v28 = vld [vmem:[#allocation10 + $0x6c] ss:$16 sps:$4 sm:$0xff]   ;;  %v2463_v29 = vld [vmem:[#allocation10 + $0x60] ss:$16 sps:$4 sm:$0xff]  }
  0x89   :  { %663 = vmatpush1.bf16.msra.mxu1 %v2382_v34  ;;  %623 = vmatprep.subr.bf16.mxu0 %v2387_v35  ;;  %v2466_v30 = vld [vmem:[#allocation10 + $0x68] ss:$16 sps:$4 sm:$0xff]   ;;  %v2471_v31 = vld [vmem:[#allocation10 + $0x84] ss:$16 sps:$4 sm:$0xff]   ;;  %v2474_v32 = vld [vmem:[#allocation10 + $0x8c] ss:$16 sps:$4 sm:$0xff]  }
  0x8a   :  { %664 = vmatprep.subr.bf16.mxu1 %v2390_v36  ;;  %v2469_v33 = vld [vmem:[#allocation10 + $0x80] ss:$16 sps:$4 sm:$0xff]   ;;  %v2472_v34 = vld [vmem:[#allocation10 + $0x88] ss:$16 sps:$4 sm:$0xff]   ;;  %v2477_v35 = vld [vmem:[#allocation10 + $0xa4] ss:$16 sps:$4 sm:$0xff]  }
  0x8b   :  { %v2475_v36 = vld [vmem:[#allocation10 + $0xa0] ss:$16 sps:$4 sm:$0xff]   ;;  %v2508_v58 = vld [vmem:[#allocation10 + $0x148] ss:$16 sps:$4 sm:$0xff]  }
  0x8c   :  { %624 = vmatpush1.bf16.msra.mxu0 %v2385_v37  ;;  %v2480_v37 = vld [vmem:[#allocation10 + $0xac] ss:$16 sps:$4 sm:$0xff]   ;;  %v2505_v57 = vld [vmem:[#allocation10 + $0x140] ss:$16 sps:$4 sm:$0xff]  }
  0x8d   :  { %665 = vmatpush1.bf16.msra.mxu1 %v2388_v38  ;;  %625 = vmatprep.subr.bf16.mxu0 %v2393_v39  ;;  %v2478_v38 = vld [vmem:[#allocation10 + $0xa8] ss:$16 sps:$4 sm:$0xff]   ;;  %v2483_v39 = vld [vmem:[#allocation10 + $0xc4] ss:$16 sps:$4 sm:$0xff]   ;;  %v2535_v13 = vld [vmem:[#allocation10 + $0x1e0] ss:$16 sps:$4 sm:$0xff]  }
  0x8e   :  { %666 = vmatprep.subr.bf16.mxu1 %v2396_v40  ;;  %v2486_v40 = vld [vmem:[#allocation10 + $0xcc] ss:$16 sps:$4 sm:$0xff]  }
  0x90   :  { %626 = vmatpush1.bf16.msra.mxu0 %v2391_v41  ;;  %v2481_v41 = vld [vmem:[#allocation10 + $0xc0] ss:$16 sps:$4 sm:$0xff]  }
  0x91   :  { %667 = vmatpush1.bf16.msra.mxu1 %v2394_v42  ;;  %627 = vmatprep.subr.bf16.mxu0 %v2399_v43  ;;  %v2484_v42 = vld [vmem:[#allocation10 + $0xc8] ss:$16 sps:$4 sm:$0xff]   ;;  %v2489_v43 = vld [vmem:[#allocation10 + $0xe4] ss:$16 sps:$4 sm:$0xff]  }
  0x92   :  { %668 = vmatprep.subr.bf16.mxu1 %v2402_v44  ;;  %v2492_v44 = vld [vmem:[#allocation10 + $0xec] ss:$16 sps:$4 sm:$0xff]  }
  0x94   :  { %628 = vmatpush1.bf16.msra.mxu0 %v2397_v45  ;;  %v2487_v45 = vld [vmem:[#allocation10 + $0xe0] ss:$16 sps:$4 sm:$0xff]  }
  0x95   :  { %669 = vmatpush1.bf16.msra.mxu1 %v2400_v46  ;;  %629 = vmatprep.subr.bf16.mxu0 %v2405_v47  ;;  %v2490_v46 = vld [vmem:[#allocation10 + $0xe8] ss:$16 sps:$4 sm:$0xff]   ;;  %v2495_v47 = vld [vmem:[#allocation10 + $0x104] ss:$16 sps:$4 sm:$0xff]  }
  0x96   :  { %670 = vmatprep.subr.bf16.mxu1 %v2408_v48  ;;  %v2498_v48 = vld [vmem:[#allocation10 + $0x10c] ss:$16 sps:$4 sm:$0xff]  }
  0x98   :  { %630 = vmatpush1.bf16.msra.mxu0 %v2403_v49  ;;  %v2493_v49 = vld [vmem:[#allocation10 + $0x100] ss:$16 sps:$4 sm:$0xff]  }
  0x99   :  { %671 = vmatpush1.bf16.msra.mxu1 %v2406_v50  ;;  %631 = vmatprep.subr.bf16.mxu0 %v2411_v51  ;;  %v2496_v50 = vld [vmem:[#allocation10 + $0x108] ss:$16 sps:$4 sm:$0xff]   ;;  %v2501_v51 = vld [vmem:[#allocation10 + $0x124] ss:$16 sps:$4 sm:$0xff]  }
  0x9a   :  { %672 = vmatprep.subr.bf16.mxu1 %v2414_v52  ;;  %v2504_v52 = vld [vmem:[#allocation10 + $0x12c] ss:$16 sps:$4 sm:$0xff]  }
  0x9c   :  { %632 = vmatpush1.bf16.msra.mxu0 %v2409_v53  ;;  %v2499_v53 = vld [vmem:[#allocation10 + $0x120] ss:$16 sps:$4 sm:$0xff]  }
  0x9d   :  { %673 = vmatpush1.bf16.msra.mxu1 %v2412_v54  ;;  %633 = vmatprep.subr.bf16.mxu0 %v2417_v55  ;;  %v2502_v54 = vld [vmem:[#allocation10 + $0x128] ss:$16 sps:$4 sm:$0xff]   ;;  %v2507_v55 = vld [vmem:[#allocation10 + $0x144] ss:$16 sps:$4 sm:$0xff]  }
  0x9e   :  { %674 = vmatprep.subr.bf16.mxu1 %v2420_v56  ;;  %v2510_v56 = vld [vmem:[#allocation10 + $0x14c] ss:$16 sps:$4 sm:$0xff]  }
  0xa0   :  { %634 = vmatpush1.bf16.msra.mxu0 %v2415_v59  ;;  %v2513_v59 = vld [vmem:[#allocation10 + $0x164] ss:$16 sps:$4 sm:$0xff]  }
  0xa1   :  { %675 = vmatpush1.bf16.msra.mxu1 %v2418_v60  ;;  %635 = vmatprep.subr.bf16.mxu0 %v2423_v61  ;;  %v2516_v60 = vld [vmem:[#allocation10 + $0x16c] ss:$16 sps:$4 sm:$0xff]   ;;  %v2511_v61 = vld [vmem:[#allocation10 + $0x160] ss:$16 sps:$4 sm:$0xff]  }
  0xa2   :  { %676 = vmatprep.subr.bf16.mxu1 %v2426_v62  ;;  %v2514_v62 = vld [vmem:[#allocation10 + $0x168] ss:$16 sps:$4 sm:$0xff]  }
  0xa4   :  { %636 = vmatpush1.bf16.msra.mxu0 %v2421_v63  ;;  %v2519_v63 = vld [vmem:[#allocation10 + $0x184] ss:$16 sps:$4 sm:$0xff]  }
  0xa5   :  { %677 = vmatpush1.bf16.msra.mxu1 %v2424_v0  ;;  %637 = vmatprep.subr.bf16.mxu0 %v2429_v1  ;;  %v2522_v0 = vld [vmem:[#allocation10 + $0x18c] ss:$16 sps:$4 sm:$0xff]   ;;  %v2517_v1 = vld [vmem:[#allocation10 + $0x180] ss:$16 sps:$4 sm:$0xff]  }
  0xa6   :  { %678 = vmatprep.subr.bf16.mxu1 %v2432_v2  ;;  %v2520_v2 = vld [vmem:[#allocation10 + $0x188] ss:$16 sps:$4 sm:$0xff]  }
  0xa8   :  { %638 = vmatpush1.bf16.msra.mxu0 %v2427_v3  ;;  %v2525_v3 = vld [vmem:[#allocation10 + $0x1a4] ss:$16 sps:$4 sm:$0xff]  }
  0xa9   :  { %679 = vmatpush1.bf16.msra.mxu1 %v2430_v4  ;;  %639 = vmatprep.subr.bf16.mxu0 %v2435_v5  ;;  %v2528_v4 = vld [vmem:[#allocation10 + $0x1ac] ss:$16 sps:$4 sm:$0xff]   ;;  %v2523_v5 = vld [vmem:[#allocation10 + $0x1a0] ss:$16 sps:$4 sm:$0xff]  }
  0xaa   :  { %680 = vmatprep.subr.bf16.mxu1 %v2438_v6  ;;  %v2526_v6 = vld [vmem:[#allocation10 + $0x1a8] ss:$16 sps:$4 sm:$0xff]  }
  0xac   :  { %640 = vmatpush1.bf16.msra.mxu0 %v2433_v7  ;;  %v2531_v7 = vld [vmem:[#allocation10 + $0x1c4] ss:$16 sps:$4 sm:$0xff]  }
  0xad   :  { %681 = vmatpush1.bf16.msra.mxu1 %v2436_v8  ;;  %641 = vmatprep.subr.bf16.mxu0 %v2441_v9  ;;  %v2534_v8 = vld [vmem:[#allocation10 + $0x1cc] ss:$16 sps:$4 sm:$0xff]   ;;  %v2529_v9 = vld [vmem:[#allocation10 + $0x1c0] ss:$16 sps:$4 sm:$0xff]  }
  0xae   :  { %682 = vmatprep.subr.bf16.mxu1 %v2444_v10  ;;  %v2532_v10 = vld [vmem:[#allocation10 + $0x1c8] ss:$16 sps:$4 sm:$0xff]  }
  0xb0   :  { %642 = vmatpush1.bf16.msra.mxu0 %v2439_v11  ;;  %v2537_v11 = vld [vmem:[#allocation10 + $0x1e4] ss:$16 sps:$4 sm:$0xff]  }
  0xb1   :  { %683 = vmatpush1.bf16.msra.mxu1 %v2442_v12  ;;  %1521 = vmatprep.subr.bf16.mxu0 %v2447_v16  ;;  %v2540_v12 = vld [vmem:[#allocation10 + $0x1ec] ss:$16 sps:$4 sm:$0xff]  }
  0xb2   :  { %1603 = vmatprep.subr.bf16.mxu1 %v2450_v18  ;;  %v2546_v16 = vld [vmem:[#allocation10 + $0x20c] ss:$16 sps:$4 sm:$0xff]  }
  0xb3   :  { %644 = vmatmul.mubr.bf16.vlgmr.msra.gmra.mrb[4].mxu0 %v112_v14 }
  0xb4   :  { %685 = vmatmul.mubr.bf16.vlgmr.msra.gmra.mrb[4].mxu1 %v112_v14  ;;  %1522 = vmatpush1.bf16.msra.mxu0 %v2445_v15  ;;  %v2538_v14 = vld [vmem:[#allocation10 + $0x1e8] ss:$16 sps:$4 sm:$0xff]   ;;  %v2543_v15 = vld [vmem:[#allocation10 + $0x204] ss:$16 sps:$4 sm:$0xff]  }
  0xb5   :  { %1604 = vmatpush1.bf16.msra.mxu1 %v2448_v17  ;;  %1523 = vmatprep.subr.bf16.mxu0 %v2453_v19 }
  0xb6   :  { %1605 = vmatprep.subr.bf16.mxu1 %v2456_v20 }
  0xb8   :  { %1524 = vmatpush1.bf16.msra.mxu0 %v2451_v21 }
  0xb9   :  { %1606 = vmatpush1.bf16.msra.mxu1 %v2454_v22  ;;  %1525 = vmatprep.subr.bf16.mxu0 %v2459_v23 }
  0xba   :  { %1607 = vmatprep.subr.bf16.mxu1 %v2462_v24 }
  0xbc   :  { %1526 = vmatpush1.bf16.msra.mxu0 %v2457_v25  ;;  %v695_v25 = vlaneseq }
  0xbd   :  { %1608 = vmatpush1.bf16.msra.mxu1 %v2460_v26  ;;  %1527 = vmatprep.subr.bf16.mxu0 %v2465_v27 }
  0xbe   :  { %1609 = vmatprep.subr.bf16.mxu1 %v2468_v28  ;;  %v2956_v26 = vshrl.u32 %v695_v25, 7  ;;  %v2583_v25 = vld [vmem:[#allocation10 + $0x2e0] ss:$16 sps:$4 sm:$0xff]  }
  0xc0   :  { %1528 = vmatpush1.bf16.msra.mxu0 %v2463_v29  ;;  %v697_v27 = vsub.s32 0, %v2956_v26  ;;  %v705_v28 = vsub.s32 2, %v2956_v26  ;;  %v693_v29 = vld [vmem:[%s2998_s4] sm:$0xf] }
  0xc1   :  { %1610 = vmatpush1.bf16.msra.mxu1 %v2466_v30  ;;  %1529 = vmatprep.subr.bf16.mxu0 %v2471_v31  ;;  %v701_v30 = vsub.s32 1, %v2956_v26  ;;  %v709_v31 = vsub.s32 3, %v2956_v26 }
  0xc2   :  { %1611 = vmatprep.subr.bf16.mxu1 %v2474_v32  ;;  %v698_v32 = vrot.slane %v693_v29, %v697_v27 }
  0xc4   :  { %1530 = vmatpush1.bf16.msra.mxu0 %v2469_v33  ;;  %v706_v33 = vrot.slane %v693_v29, %v705_v28 }
  0xc5   :  { %1612 = vmatpush1.bf16.msra.mxu1 %v2472_v34  ;;  %1531 = vmatprep.subr.bf16.mxu0 %v2477_v35 }
  0xc6   :  { %1613 = vmatprep.subr.bf16.mxu1 %v2480_v37  ;;  %v710_v37 = vrot.slane %v693_v29, %v709_v31 }
  0xc8   :  { %1532 = vmatpush1.bf16.msra.mxu0 %v2475_v36  ;;  %v702_v36 = vrot.slane %v693_v29, %v701_v30  ;;  %v2586_v29 = vld [vmem:[#allocation10 + $0x2e8] ss:$16 sps:$4 sm:$0xff]  }
  0xc9   :  { %1614 = vmatpush1.bf16.msra.mxu1 %v2478_v38  ;;  %1533 = vmatprep.subr.bf16.mxu0 %v2483_v39 }
  0xca   :  { %1615 = vmatprep.subr.bf16.mxu1 %v2486_v40 }
  0xcc   :  { %1534 = vmatpush1.bf16.msra.mxu0 %v2481_v41 }
  0xcd   :  { %1616 = vmatpush1.bf16.msra.mxu1 %v2484_v42  ;;  %1535 = vmatprep.subr.bf16.mxu0 %v2489_v43 }
  0xce   :  { %1617 = vmatprep.subr.bf16.mxu1 %v2492_v44 }
  0xd0   :  { %1536 = vmatpush1.bf16.msra.mxu0 %v2487_v45 }
  0xd1   :  { %1618 = vmatpush1.bf16.msra.mxu1 %v2490_v46  ;;  %1537 = vmatprep.subr.bf16.mxu0 %v2495_v47 }
  0xd2   :  { %1619 = vmatprep.subr.bf16.mxu1 %v2498_v48 }
  0xd4   :  { %1538 = vmatpush1.bf16.msra.mxu0 %v2493_v49 }
  0xd5   :  { %1620 = vmatpush1.bf16.msra.mxu1 %v2496_v50  ;;  %1539 = vmatprep.subr.bf16.mxu0 %v2501_v51 }
  0xd6   :  { %1621 = vmatprep.subr.bf16.mxu1 %v2504_v52 }
  0xd8   :  { %1540 = vmatpush1.bf16.msra.mxu0 %v2499_v53 }
  0xd9   :  { %1622 = vmatpush1.bf16.msra.mxu1 %v2502_v54  ;;  %1541 = vmatprep.subr.bf16.mxu0 %v2507_v55 }
  0xda   :  { %1623 = vmatprep.subr.bf16.mxu1 %v2510_v56 }
  0xdc   :  { %1542 = vmatpush1.bf16.msra.mxu0 %v2505_v57 }
  0xdd   :  { %1624 = vmatpush1.bf16.msra.mxu1 %v2508_v58  ;;  %1543 = vmatprep.subr.bf16.mxu0 %v2513_v59  ;;  %v2541_v59 = vld [vmem:[#allocation10 + $0x200] ss:$16 sps:$4 sm:$0xff]  }
  0xde   :  { %1625 = vmatprep.subr.bf16.mxu1 %v2516_v60  ;;  %v2544_v60 = vld [vmem:[#allocation10 + $0x208] ss:$16 sps:$4 sm:$0xff]  }
  0xe0   :  { %1544 = vmatpush1.bf16.msra.mxu0 %v2511_v61 }
  0xe1   :  { %1626 = vmatpush1.bf16.msra.mxu1 %v2514_v62  ;;  %1545 = vmatprep.subr.bf16.mxu0 %v2519_v63  ;;  %v2549_v62 = vld [vmem:[#allocation10 + $0x224] ss:$16 sps:$4 sm:$0xff]   ;;  %v2552_v63 = vld [vmem:[#allocation10 + $0x22c] ss:$16 sps:$4 sm:$0xff]  }
  0xe2   :  { %1627 = vmatprep.subr.bf16.mxu1 %v2522_v0 }
  0xe4   :  { %1546 = vmatpush1.bf16.msra.mxu0 %v2517_v1  ;;  %v2547_v1 = vld [vmem:[#allocation10 + $0x220] ss:$16 sps:$4 sm:$0xff]  }
  0xe5   :  { %1628 = vmatpush1.bf16.msra.mxu1 %v2520_v2  ;;  %1547 = vmatprep.subr.bf16.mxu0 %v2525_v3  ;;  %v2550_v2 = vld [vmem:[#allocation10 + $0x228] ss:$16 sps:$4 sm:$0xff]   ;;  %v2555_v3 = vld [vmem:[#allocation10 + $0x244] ss:$16 sps:$4 sm:$0xff]  }
  0xe6   :  { %1629 = vmatprep.subr.bf16.mxu1 %v2528_v4  ;;  %v2558_v4 = vld [vmem:[#allocation10 + $0x24c] ss:$16 sps:$4 sm:$0xff]  }
  0xe8   :  { %1548 = vmatpush1.bf16.msra.mxu0 %v2523_v5  ;;  %v2553_v5 = vld [vmem:[#allocation10 + $0x240] ss:$16 sps:$4 sm:$0xff]  }
  0xe9   :  { %1630 = vmatpush1.bf16.msra.mxu1 %v2526_v6  ;;  %1549 = vmatprep.subr.bf16.mxu0 %v2531_v7  ;;  %v2556_v6 = vld [vmem:[#allocation10 + $0x248] ss:$16 sps:$4 sm:$0xff]   ;;  %v2561_v7 = vld [vmem:[#allocation10 + $0x264] ss:$16 sps:$4 sm:$0xff]  }
  0xea   :  { %1631 = vmatprep.subr.bf16.mxu1 %v2534_v8  ;;  %v2564_v8 = vld [vmem:[#allocation10 + $0x26c] ss:$16 sps:$4 sm:$0xff]  }
  0xec   :  { %1550 = vmatpush1.bf16.msra.mxu0 %v2529_v9  ;;  %v2559_v9 = vld [vmem:[#allocation10 + $0x260] ss:$16 sps:$4 sm:$0xff]  }
  0xed   :  { %1632 = vmatpush1.bf16.msra.mxu1 %v2532_v10  ;;  %1551 = vmatprep.subr.bf16.mxu0 %v2537_v11  ;;  %v2562_v10 = vld [vmem:[#allocation10 + $0x268] ss:$16 sps:$4 sm:$0xff]   ;;  %v2567_v11 = vld [vmem:[#allocation10 + $0x284] ss:$16 sps:$4 sm:$0xff]  }
  0xee   :  { %1633 = vmatprep.subr.bf16.mxu1 %v2540_v12  ;;  %v2570_v12 = vld [vmem:[#allocation10 + $0x28c] ss:$16 sps:$4 sm:$0xff]  }
  0xf0   :  { %1552 = vmatpush1.bf16.msra.mxu0 %v2535_v13  ;;  %v2565_v13 = vld [vmem:[#allocation10 + $0x280] ss:$16 sps:$4 sm:$0xff]  }
  0xf1   :  { %1634 = vmatpush1.bf16.msra.mxu1 %v2538_v14  ;;  %1562 = vmatprep.subr.bf16.mxu0 %v2543_v15  ;;  %v2568_v14 = vld [vmem:[#allocation10 + $0x288] ss:$16 sps:$4 sm:$0xff]   ;;  %v2573_v15 = vld [vmem:[#allocation10 + $0x2a4] ss:$16 sps:$4 sm:$0xff]  }
  0xf2   :  { %1644 = vmatprep.subr.bf16.mxu1 %v2546_v16  ;;  %v2576_v16 = vld [vmem:[#allocation10 + $0x2ac] ss:$16 sps:$4 sm:$0xff]  }
 0x146   :  { %v243_v17 = vpop.f32.mrb[0].mxu0 }
 0x147   :  { %v284_v18 = vpop.f32.mrb[0].mxu1  ;;  %v245_v19 = vpop.f32.mrb[1].mxu0 }
 0x148   :  { %v286_v20 = vpop.f32.mrb[1].mxu1  ;;  %v247_v21 = vpop.f32.mrb[2].mxu0 }
 0x149   :  { %v288_v22 = vpop.f32.mrb[2].mxu1  ;;  %v248_v23 = vpop.f32.mrb[3].mxu0  ;;  %v2577_v21 = vld [vmem:[#allocation10 + $0x2c0] ss:$16 sps:$4 sm:$0xff]  }
 0x14a   :  { %v289_v24 = vpop.f32.mrb[3].mxu1  ;;  %v2580_v22 = vld [vmem:[#allocation10 + $0x2c8] ss:$16 sps:$4 sm:$0xff]   ;;  %v2585_v23 = vld [vmem:[#allocation10 + $0x2e4] ss:$16 sps:$4 sm:$0xff]  }
 0x14b   :  { %v2588_v24 = vld [vmem:[#allocation10 + $0x2ec] ss:$16 sps:$4 sm:$0xff]  }
 0x186   :  { %v645_v34 = vpop.f32.mrb[4].mxu0 }
 0x187   :  { %v686_v35 = vpop.f32.mrb[4].mxu1  ;;  %v646_v38 = vadd.f32 %v645_v34, %v243_v17  ;;  %v647_v40 = vpop.f32.mrb[5].mxu0  ;;  %v2571_v17 = vld [vmem:[#allocation10 + $0x2a0] ss:$16 sps:$4 sm:$0xff]  }
 0x188   :  { %v687_v39 = vadd.f32 %v686_v35, %v284_v18  ;;  %v688_v41 = vpop.f32.mrb[5].mxu1  ;;  %v648_v42 = vadd.f32 %v647_v40, %v245_v19  ;;  %v649_v44 = vpop.f32.mrb[6].mxu0  ;;  %v2574_v18 = vld [vmem:[#allocation10 + $0x2a8] ss:$16 sps:$4 sm:$0xff]   ;;  %v2579_v19 = vld [vmem:[#allocation10 + $0x2c4] ss:$16 sps:$4 sm:$0xff]  }
 0x189   :  { %v689_v43 = vadd.f32 %v688_v41, %v286_v20  ;;  %v690_v45 = vpop.f32.mrb[6].mxu1  ;;  %v715_v46 = vadd.f32 %v698_v32, %v646_v38  ;;  %v650_v48 = vpop.f32.mrb[7].mxu0  ;;  %v2582_v20 = vld [vmem:[#allocation10 + $0x2cc] ss:$16 sps:$4 sm:$0xff]   ;;  %v2591_v32 = vld [vmem:[#allocation10 + $0x304] ss:$16 sps:$4 sm:$0xff]  }
 0x18a   :  { %v2973_v47 = vadd.f32 %v706_v33, %v687_v39  ;;  %v691_v49 = vpop.f32.mrb[7].mxu1  ;;  %v716_v50 = vadd.f32 %v702_v36, %v648_v42  ;;  %v2594_v33 = vld [vmem:[#allocation10 + $0x30c] ss:$16 sps:$4 sm:$0xff]   ;;  %v2589_v34 = vld [vmem:[#allocation10 + $0x300] ss:$16 sps:$4 sm:$0xff]  }
 0x18b   :  { %v718_v51 = vadd.f32 %v710_v37, %v689_v43  ;;  %v719_v52 = vmul.f32 0.2, %v715_v46  ;;  %v2592_v35 = vld [vmem:[#allocation10 + $0x308] ss:$16 sps:$4 sm:$0xff]   ;;  %v2597_v36 = vld [vmem:[#allocation10 + $0x324] ss:$16 sps:$4 sm:$0xff]  }
 0x18c   :  { %v720_v53 = vmul.f32 0.2, %v716_v50  ;;  %v2600_v37 = vld [vmem:[#allocation10 + $0x32c] ss:$16 sps:$4 sm:$0xff]   ;;  %v2595_v38 = vld [vmem:[#allocation10 + $0x320] ss:$16 sps:$4 sm:$0xff]  }
 0x18d   :  { %v722_v54 = vmul.f32 0.2, %v718_v51  ;;  %v723_v55 = vmax.f32 %v715_v46, %v719_v52  ;;  %v2598_v39 = vld [vmem:[#allocation10 + $0x328] ss:$16 sps:$4 sm:$0xff]   ;;  %v2603_v40 = vld [vmem:[#allocation10 + $0x344] ss:$16 sps:$4 sm:$0xff]  }
 0x18e   :  { %v724_v56 = vmax.f32 %v716_v50, %v720_v53  ;;  %v2606_v41 = vld [vmem:[#allocation10 + $0x34c] ss:$16 sps:$4 sm:$0xff]   ;;  %v2601_v42 = vld [vmem:[#allocation10 + $0x340] ss:$16 sps:$4 sm:$0xff]   ;;  %v2604_v43 = vld [vmem:[#allocation10 + $0x348] ss:$16 sps:$4 sm:$0xff]  }
 0x18f   :  { %v726_v57 = vmax.f32 %v718_v51, %v722_v54  ;;  %v727_v61 = vpack.c.bf16 %v723_v55, %v723_v55  ;;  %v2609_v44 = vld [vmem:[#allocation10 + $0x364] ss:$16 sps:$4 sm:$0xff]   ;;  %v2612_v45 = vld [vmem:[#allocation10 + $0x36c] ss:$16 sps:$4 sm:$0xff]   ;;  %v2607_v46 = vld [vmem:[#allocation10 + $0x360] ss:$16 sps:$4 sm:$0xff]  }
 0x190   :  { %v728_v58 = vpack.c.bf16 %v724_v56, %v724_v56  ;;  %v2610_v48 = vld [vmem:[#allocation10 + $0x368] ss:$16 sps:$4 sm:$0xff]   ;;  %v2615_v49 = vld [vmem:[#allocation10 + $0x384] ss:$16 sps:$4 sm:$0xff]   ;;  %v2618_v50 = vld [vmem:[#allocation10 + $0x38c] ss:$16 sps:$4 sm:$0xff]  }
 0x191   :  { %v730_v0 = vpack.c.bf16 %v726_v57, %v726_v57  ;;  %v2613_v51 = vld [vmem:[#allocation10 + $0x380] ss:$16 sps:$4 sm:$0xff]   ;;  %v2616_v52 = vld [vmem:[#allocation10 + $0x388] ss:$16 sps:$4 sm:$0xff]   ;;  %v2621_v53 = vld [vmem:[#allocation10 + $0x3a4] ss:$16 sps:$4 sm:$0xff]  }
 0x192   :  { %1553 = vmatprep.mubr.bf16.mxu0 %v728_v58  ;;  %1635 = vmatprep.mubr.bf16.mxu1 %v728_v58  ;;  %v2624_v54 = vld [vmem:[#allocation10 + $0x3ac] ss:$16 sps:$4 sm:$0xff]   ;;  %v2619_v55 = vld [vmem:[#allocation10 + $0x3a0] ss:$16 sps:$4 sm:$0xff]   ;;  %v2622_v56 = vld [vmem:[#allocation10 + $0x3a8] ss:$16 sps:$4 sm:$0xff]  }
 0x193   :  { %1554 = vmatmul.mubr.bf16.vlgmr.msra.gmra.mrb[8].mxu0 %v727_v61  ;;  %1636 = vmatmul.mubr.bf16.vlgmr.msra.gmra.mrb[8].mxu1 %v727_v61  ;;  %v2627_v57 = vld [vmem:[#allocation10 + $0x3c4] ss:$16 sps:$4 sm:$0xff]   ;;  %v2630_v58 = vld [vmem:[#allocation10 + $0x3cc] ss:$16 sps:$4 sm:$0xff]   ;;  %v721_v61 = vmul.f32 0.2, %v2973_v47 }
 0x194   :  { %1563 = vmatpush1.bf16.msra.mxu0 %v2541_v59  ;;  %1645 = vmatpush1.bf16.msra.mxu1 %v2544_v60  ;;  %v2625_v59 = vld [vmem:[#allocation10 + $0x3c0] ss:$16 sps:$4 sm:$0xff]   ;;  %v2628_v60 = vld [vmem:[#allocation10 + $0x3c8] ss:$16 sps:$4 sm:$0xff]  }
 0x195   :  { %1594 = vmatprep.mubr.bf16.mxu0 %v730_v0  ;;  %1676 = vmatprep.mubr.bf16.mxu1 %v730_v0  ;;  %v2631_v0 = vld [vmem:[#allocation10 + $0x3e0] ss:$16 sps:$4 sm:$0xff]  }
 0x196   :  { %1564 = vmatprep.subr.bf16.mxu0 %v2549_v62  ;;  %1646 = vmatprep.subr.bf16.mxu1 %v2552_v63  ;;  %v2633_v62 = vld [vmem:[#allocation10 + $0x3e4] ss:$16 sps:$4 sm:$0xff]   ;;  %v2636_v63 = vld [vmem:[#allocation10 + $0x3ec] ss:$16 sps:$4 sm:$0xff]  }
 0x198   :  { %1565 = vmatpush1.bf16.msra.mxu0 %v2547_v1  ;;  %1647 = vmatpush1.bf16.msra.mxu1 %v2550_v2  ;;  %v2634_v1 = vld [vmem:[#allocation10 + $0x3e8] ss:$16 sps:$4 sm:$0xff]   ;;  %v725_v2 = vmax.f32 %v2973_v47, %v721_v61  ;;  %v2645_v47 = vld [vmem:[#allocation11 + $0x50] sm:$0xff]  }
 0x199   :  { %1566 = vmatprep.subr.bf16.mxu0 %v2555_v3  ;;  %1648 = vmatprep.subr.bf16.mxu1 %v2558_v4  ;;  %v2637_v3 = vld [vmem:[#allocation11 + $0x40] sm:$0xff]  }
 0x19a   :  { %v2638_v4 = vld [vmem:[#allocation11 + $0xc0] sm:$0xff]  }
 0x19c   :  { %1567 = vmatpush1.bf16.msra.mxu0 %v2553_v5  ;;  %1649 = vmatpush1.bf16.msra.mxu1 %v2556_v6  ;;  %v2639_v5 = vld [vmem:[#allocation11] sm:$0xff]  }
 0x19d   :  { %1568 = vmatprep.subr.bf16.mxu0 %v2561_v7  ;;  %1650 = vmatprep.subr.bf16.mxu1 %v2564_v8  ;;  %v2640_v6 = vld [vmem:[#allocation11 + $0x80] sm:$0xff]   ;;  %v729_v7 = vpack.c.bf16 %v725_v2, %v725_v2  ;;  %v2641_v8 = vld [vmem:[#allocation11 + $0x48] sm:$0xff]  }
 0x1a0   :  { %1569 = vmatpush1.bf16.msra.mxu0 %v2559_v9  ;;  %1651 = vmatpush1.bf16.msra.mxu1 %v2562_v10  ;;  %v2642_v9 = vld [vmem:[#allocation11 + $0xc8] sm:$0xff]  }
 0x1a1   :  { %1570 = vmatprep.subr.bf16.mxu0 %v2567_v11  ;;  %1652 = vmatprep.subr.bf16.mxu1 %v2570_v12  ;;  %v2643_v10 = vld [vmem:[#allocation11 + $0x8] sm:$0xff]   ;;  %v2646_v12 = vld [vmem:[#allocation11 + $0xd0] sm:$0xff]  }
 0x1a2   :  { %v2644_v11 = vld [vmem:[#allocation11 + $0x88] sm:$0xff]  }
 0x1a4   :  { %1571 = vmatpush1.bf16.msra.mxu0 %v2565_v13  ;;  %1653 = vmatpush1.bf16.msra.mxu1 %v2568_v14  ;;  %v2647_v13 = vld [vmem:[#allocation11 + $0x10] sm:$0xff]  }
 0x1a5   :  { %1572 = vmatprep.subr.bf16.mxu0 %v2573_v15  ;;  %1654 = vmatprep.subr.bf16.mxu1 %v2576_v16  ;;  %v2648_v14 = vld [vmem:[#allocation11 + $0x90] sm:$0xff]   ;;  %v2649_v15 = vld [vmem:[#allocation11 + $0x58] sm:$0xff]  }
 0x1a6   :  { %v2650_v16 = vld [vmem:[#allocation11 + $0xd8] sm:$0xff]  }
 0x1a8   :  { %1573 = vmatpush1.bf16.msra.mxu0 %v2571_v17  ;;  %1655 = vmatpush1.bf16.msra.mxu1 %v2574_v18  ;;  %v2651_v17 = vld [vmem:[#allocation11 + $0x18] sm:$0xff]  }
 0x1a9   :  { %1574 = vmatprep.subr.bf16.mxu0 %v2579_v19  ;;  %1656 = vmatprep.subr.bf16.mxu1 %v2582_v20  ;;  %v2652_v18 = vld [vmem:[#allocation11 + $0x98] sm:$0xff]   ;;  %v2653_v19 = vld [vmem:[#allocation11 + $0x60] sm:$0xff]  }
 0x1aa   :  { %v2654_v20 = vld [vmem:[#allocation11 + $0xe0] sm:$0xff]  }
 0x1ac   :  { %1575 = vmatpush1.bf16.msra.mxu0 %v2577_v21  ;;  %1657 = vmatpush1.bf16.msra.mxu1 %v2580_v22  ;;  %v2655_v21 = vld [vmem:[#allocation11 + $0x20] sm:$0xff]  }
 0x1ad   :  { %1576 = vmatprep.subr.bf16.mxu0 %v2585_v23  ;;  %1658 = vmatprep.subr.bf16.mxu1 %v2588_v24  ;;  %v2656_v22 = vld [vmem:[#allocation11 + $0xa0] sm:$0xff]   ;;  %v2657_v23 = vld [vmem:[#allocation11 + $0x68] sm:$0xff]  }
 0x1ae   :  { %v2658_v24 = vld [vmem:[#allocation11 + $0xe8] sm:$0xff]  }
 0x1b0   :  { %1577 = vmatpush1.bf16.msra.mxu0 %v2583_v25  ;;  %1659 = vmatpush1.bf16.msra.mxu1 %v2586_v29  ;;  %v2659_v25 = vld [vmem:[#allocation11 + $0x28] sm:$0xff]  }
 0x1b1   :  { %1578 = vmatprep.subr.bf16.mxu0 %v2591_v32  ;;  %1660 = vmatprep.subr.bf16.mxu1 %v2594_v33  ;;  %v2660_v29 = vld [vmem:[#allocation11 + $0xa8] sm:$0xff]   ;;  %v2661_v32 = vld [vmem:[#allocation11 + $0x70] sm:$0xff]  }
 0x1b2   :  { %v2662_v33 = vld [vmem:[#allocation11 + $0xf0] sm:$0xff]  }
 0x1b4   :  { %1579 = vmatpush1.bf16.msra.mxu0 %v2589_v34  ;;  %1661 = vmatpush1.bf16.msra.mxu1 %v2592_v35  ;;  %v2663_v34 = vld [vmem:[#allocation11 + $0x30] sm:$0xff]  }
 0x1b5   :  { %1580 = vmatprep.subr.bf16.mxu0 %v2597_v36  ;;  %1662 = vmatprep.subr.bf16.mxu1 %v2600_v37  ;;  %v2664_v35 = vld [vmem:[#allocation11 + $0xb0] sm:$0xff]   ;;  %v2665_v36 = vld [vmem:[#allocation11 + $0x78] sm:$0xff]  }
 0x1b6   :  { %v2666_v37 = vld [vmem:[#allocation11 + $0xf8] sm:$0xff]  }
 0x1b8   :  { %1581 = vmatpush1.bf16.msra.mxu0 %v2595_v38  ;;  %1663 = vmatpush1.bf16.msra.mxu1 %v2598_v39  ;;  %v2667_v38 = vld [vmem:[#allocation11 + $0x38] sm:$0xff]  }
 0x1b9   :  { %1582 = vmatprep.subr.bf16.mxu0 %v2603_v40  ;;  %1664 = vmatprep.subr.bf16.mxu1 %v2606_v41  ;;  %v2668_v39 = vld [vmem:[#allocation11 + $0xb8] sm:$0xff]  }
 0x1ba   :  { %v859_v40 = vld [vmem:[%s3000_s6] sm:$0xf] }
 0x1bb   :  { %v864_v41 = vrot.slane %v859_v40, %v697_v27 }
 0x1bc   :  { %1583 = vmatpush1.bf16.msra.mxu0 %v2601_v42  ;;  %1665 = vmatpush1.bf16.msra.mxu1 %v2604_v43  ;;  %v872_v42 = vrot.slane %v859_v40, %v705_v28  ;;  %v868_v43 = vrot.slane %v859_v40, %v701_v30 }
 0x1bd   :  { %1584 = vmatprep.subr.bf16.mxu0 %v2609_v44  ;;  %1666 = vmatprep.subr.bf16.mxu1 %v2612_v45  ;;  %v876_v44 = vrot.slane %v859_v40, %v709_v31 }
 0x1c0   :  { %1585 = vmatpush1.bf16.msra.mxu0 %v2607_v46  ;;  %1667 = vmatpush1.bf16.msra.mxu1 %v2610_v48 }
 0x1c1   :  { %1586 = vmatprep.subr.bf16.mxu0 %v2615_v49  ;;  %1668 = vmatprep.subr.bf16.mxu1 %v2618_v50 }
 0x1c4   :  { %1587 = vmatpush1.bf16.msra.mxu0 %v2613_v51  ;;  %1669 = vmatpush1.bf16.msra.mxu1 %v2616_v52 }
 0x1c5   :  { %1588 = vmatprep.subr.bf16.mxu0 %v2621_v53  ;;  %1670 = vmatprep.subr.bf16.mxu1 %v2624_v54 }
 0x1c8   :  { %1589 = vmatpush1.bf16.msra.mxu0 %v2619_v55  ;;  %1671 = vmatpush1.bf16.msra.mxu1 %v2622_v56 }
 0x1c9   :  { %1590 = vmatprep.subr.bf16.mxu0 %v2627_v57  ;;  %1672 = vmatprep.subr.bf16.mxu1 %v2630_v58 }
 0x1cc   :  { %1591 = vmatpush1.bf16.msra.mxu0 %v2625_v59  ;;  %1673 = vmatpush1.bf16.msra.mxu1 %v2628_v60 }
 0x1cd   :  { %1592 = vmatprep.subr.bf16.mxu0 %v2633_v62  ;;  %1674 = vmatprep.subr.bf16.mxu1 %v2636_v63 }
 0x1d0   :  { %1593 = vmatpush1.bf16.msra.mxu0 %v2631_v0  ;;  %1675 = vmatpush1.bf16.msra.mxu1 %v2634_v1 }
 0x1d1   :  { %2278 = vmatprep.subr.bf16.mxu0 %v2637_v3  ;;  %2300 = vmatprep.subr.bf16.mxu1 %v2638_v4 }
 0x1d3   :  { %1595 = vmatmul.mubr.bf16.vlgmr.msra.gmra.mrb[8].mxu0 %v729_v7  ;;  %1677 = vmatmul.mubr.bf16.vlgmr.msra.gmra.mrb[8].mxu1 %v729_v7 }
 0x1d4   :  { %2279 = vmatpush3.bf16.msra.mxu0 %v2639_v5  ;;  %2301 = vmatpush3.bf16.msra.mxu1 %v2640_v6 }
 0x1d5   :  { %2280 = vmatprep.subr.bf16.mxu0 %v2641_v8  ;;  %2302 = vmatprep.subr.bf16.mxu1 %v2642_v9  ;;  %v2034_v9 = vstv %s3002_s8 }
 0x1d8   :  { %2281 = vmatpush3.bf16.msra.mxu0 %v2643_v10  ;;  %2303 = vmatpush3.bf16.msra.mxu1 %v2644_v11 }
 0x1d9   :  { %2282 = vmatprep.subr.bf16.mxu0 %v2645_v47  ;;  %2304 = vmatprep.subr.bf16.mxu1 %v2646_v12 }
 0x1dc   :  { %2283 = vmatpush3.bf16.msra.mxu0 %v2647_v13  ;;  %2305 = vmatpush3.bf16.msra.mxu1 %v2648_v14 }
 0x1dd   :  { %2284 = vmatprep.subr.bf16.mxu0 %v2649_v15  ;;  %2306 = vmatprep.subr.bf16.mxu1 %v2650_v16 }
 0x1e0   :  { %2285 = vmatpush3.bf16.msra.mxu0 %v2651_v17  ;;  %2307 = vmatpush3.bf16.msra.mxu1 %v2652_v18 }
 0x1e1   :  { %2286 = vmatprep.subr.bf16.mxu0 %v2653_v19  ;;  %2308 = vmatprep.subr.bf16.mxu1 %v2654_v20 }
 0x1e4   :  { %2287 = vmatpush3.bf16.msra.mxu0 %v2655_v21  ;;  %2309 = vmatpush3.bf16.msra.mxu1 %v2656_v22 }
 0x1e5   :  { %2288 = vmatprep.subr.bf16.mxu0 %v2657_v23  ;;  %2310 = vmatprep.subr.bf16.mxu1 %v2658_v24 }
 0x1e8   :  { %2289 = vmatpush3.bf16.msra.mxu0 %v2659_v25  ;;  %2311 = vmatpush3.bf16.msra.mxu1 %v2660_v29 }
 0x1e9   :  { %2290 = vmatprep.subr.bf16.mxu0 %v2661_v32  ;;  %2312 = vmatprep.subr.bf16.mxu1 %v2662_v33 }
 0x1ec   :  { %2291 = vmatpush3.bf16.msra.mxu0 %v2663_v34  ;;  %2313 = vmatpush3.bf16.msra.mxu1 %v2664_v35 }
 0x1ed   :  { %2292 = vmatprep.subr.bf16.mxu0 %v2665_v36  ;;  %2314 = vmatprep.subr.bf16.mxu1 %v2666_v37 }
 0x1f0   :  { %2293 = vmatpush3.bf16.msra.mxu0 %v2667_v38  ;;  %2315 = vmatpush3.bf16.msra.mxu1 %v2668_v39 }
 0x2a6   :  { %v1596_v45 = vpop.f32.mrb[8].mxu0  ;;  %v1678_v46 = vpop.f32.mrb[8].mxu1 }
 0x2a7   :  { %v2322_v48 = vadd.f32 %v1596_v45, %v864_v41  ;;  %v2324_v49 = vadd.f32 %v1678_v46, %v872_v42  ;;  %v1598_v50 = vpop.f32.mrb[9].mxu0  ;;  %v1680_v51 = vpop.f32.mrb[9].mxu1 }
 0x2a8   :  { %v2323_v52 = vadd.f32 %v1598_v50, %v868_v43  ;;  %v2325_v53 = vadd.f32 %v1680_v51, %v876_v44  ;;  %v1600_v54 = vpop.f32.mrb[10].mxu0  ;;  %v1682_v55 = vpop.f32.mrb[10].mxu1 }
 0x2a9   :  { %v1685_v27 = vmul.f32 0.2, %v2322_v48  ;;  %v1687_v56 = vmul.f32 0.2, %v2324_v49  ;;  %v1601_v57 = vpop.f32.mrb[11].mxu0  ;;  %v1683_v28 = vpop.f32.mrb[11].mxu1 }
 0x2aa   :  { %v1686_v58 = vmul.f32 0.2, %v2323_v52  ;;  %v1688_v59 = vmul.f32 0.2, %v2325_v53 }
 0x2ab   :  { %v1689_v30 = vmax.f32 %v2322_v48, %v1685_v27  ;;  %v1691_v60 = vmax.f32 %v2324_v49, %v1687_v56 }
 0x2ac   :  { %v1690_v26 = vmax.f32 %v2323_v52, %v1686_v58  ;;  %v1692_v31 = vmax.f32 %v2325_v53, %v1688_v59 }
 0x2ad   :  { %v1693_v63 = vpack.c.bf16 %v1689_v30, %v1689_v30  ;;  %v1695_v0 = vpack.c.bf16 %v1691_v60, %v1691_v60 }
 0x2ae   :  { %v1694_v61 = vpack.c.bf16 %v1690_v26, %v1690_v26  ;;  %v1696_v62 = vpack.c.bf16 %v1692_v31, %v1692_v31 }
 0x2b0   :  { %1985 = vmatprep.mubr.bf16.mxu0 %v1694_v61  ;;  %2025 = vmatprep.mubr.bf16.mxu1 %v1696_v62 }
 0x2b1   :  { %1986 = vmatmul.mubr.bf16.vlgmr.msra.gmra.mrb[12].mxu0 %v1693_v63  ;;  %2026 = vmatmul.mubr.bf16.vlgmr.msra.gmra.mrb[12].mxu1 %v1695_v0 }
 0x384   :  { %v2294_v1 = vpop.f32.mrb[12].mxu0  ;;  %v2316_v2 = vpop.f32.mrb[12].mxu1 }
 0x385   :  { %v2295_v3 = vpop.f32.mrb[13].mxu0  ;;  %v2317_v4 = vpop.f32.mrb[13].mxu1 }
 0x386   :  { %v2296_v5 = vadd.f32 %v2295_v3, %v2294_v1  ;;  %v2318_v6 = vadd.f32 %v2317_v4, %v2316_v2  ;;  %v2297_v7 = vpop.f32.mrb[14].mxu0  ;;  %v2319_v8 = vpop.f32.mrb[14].mxu1 }
 0x387   :  { %v2298_v10 = vpop.f32.mrb[15].mxu0  ;;  %v2320_v11 = vpop.f32.mrb[15].mxu1 }
 0x388   :  { %v2028_v47 = vadd.f32 %v2318_v6, %v2296_v5 }
 0x38a   :  { %v2035_v12 = vadd.f32 %v2034_v9, %v2028_v47 }
 0x38c   :  { %2037 = vst.msk [vmem:[%s3003_s9] sm:$0xff] %vm2036_vm2, %v2035_v12 }
 0x38d   :  { %2042 = vsyncpa [#allocation4], 1 }
 0x38e   :  { %2043 = vsyncpa [#allocation6], 1 }
 0x38f   :  { %2044 = vsyncpa [#allocation9], 1 }
 0x390   :  { %2045 = vsyncpa [#allocation12], 1 }

</bundles_post_ra>
